<compile_context>
chip_gen: v7x
topology: tpu7x:2x2x1
jax: 0.10.0
libtpu: 0.0.40
codegen_flags: <defaults>
</compile_context>

<pallas_src>
import jax
import jax.numpy as jnp
from jax.experimental import pallas as pl
from jax.experimental.pallas import tpu as pltpu

_RED_KEYS = ("reduction_g", "reduction_p2g", "reduction_p3g",
             "reduction_p20", "reduction_p21",
             "reduction_p30", "reduction_p31", "reduction_p32")
_FC_KEYS = ("fc_id_2048_0", "fc_id_2048_1", "fc_id_2048_2",
            "fc_id_256_1_0", "fc_id_256_1_1",
            "fc_id_256_2_0", "fc_id_256_2_1", "fc_id_256_2_2")
_NUM_HEADS = 8
_VMEM_LIMIT = 32 * 1024 * 1024   # fits v5e/v6e (<=128 MiB phys) and v7x (64 MiB)


# ------------------------- in-kernel helpers ---------------------------------


def _pooled_parts(p1, p2, p3):
    """Max-pool the 8 MGN bands -> 8 (Bt, C) arrays, in `predict` concat order:
       [fg_p1, fg_p2, fg_p3, f0_p2, f1_p2, f0_p3, f1_p3, f2_p3].
    Global pools are derived from the part maxes (exact for max)."""
    h2 = p2.shape[1] // 2     # 2 vertical parts of p2
    h3 = p3.shape[1] // 3     # 3 vertical parts of p3
    g1 = jnp.max(p1, axis=1)
    m20 = jnp.max(p2[:, 0:h2, :], axis=1)
    m21 = jnp.max(p2[:, h2:2 * h2, :], axis=1)
    m30 = jnp.max(p3[:, 0:h3, :], axis=1)
    m31 = jnp.max(p3[:, h3:2 * h3, :], axis=1)
    m32 = jnp.max(p3[:, 2 * h3:3 * h3, :], axis=1)
    g2 = jnp.maximum(m20, m21)
    g3 = jnp.maximum(jnp.maximum(m30, m31), m32)
    return (g1, g2, g3, m20, m21, m30, m31, m32)


# ------------------------- Pallas kernels ------------------------------------


def _mgn_eval_kernel(p1_ref, p2_ref, p3_ref, w_ref, bias_ref, out_ref):
    """Eval mode: 8 heads, BN folded into w/bias host-side.

    p1_ref:(Bt,48,C) p2/p3_ref:(Bt,192,C) bf16; w_ref:(8,C,F) bf16 stacked;
    bias_ref:(8,1,F) f32; out_ref:(Bt,8F) f32 = lane-dense `predict` slab.
    """
    f = w_ref.shape[-1]
    parts = _pooled_parts(p1_ref[...], p2_ref[...], p3_ref[...])
    for h, pooled in enumerate(parts):
        y = jnp.dot(pooled, w_ref[h], preferred_element_type=jnp.float32)
        out_ref[:, h * f:(h + 1) * f] = jnp.maximum(y + bias_ref[h], 0.0)


def _mgn_train_kernel(p1_ref, p2_ref, p3_ref, w_ref, gamma_ref, beta_ref,
                      fcw_ref, fcb_ref, feat_ref, logits_ref, y_all):
    """Training mode: batch-blocked accumulate, finalize on the last grid step.

    Per step: pool + per-head 1x1 conv for this batch block, write pre-BN
    activations into resident y_all:(B,8F).  Last step: full-batch BN
    (single-pass E[x^2]-E[x]^2) + ReLU -> feat_ref:(B,8F), then 8 fused
    (lane-padded) FC classifiers -> logits_ref:(B,8*ncPad).
    """
    f = w_ref.shape[-1]
    ncp = fcw_ref.shape[-1]
    bt = p1_ref.shape[0]
    btot = y_all.shape[0]
    step = pl.program_id(0)
    row0 = pl.multiple_of(step * bt, bt)

    parts = _pooled_parts(p1_ref[...], p2_ref[...], p3_ref[...])
    for h, pooled in enumerate(parts):
        y = jnp.dot(pooled, w_ref[h], preferred_element_type=jnp.float32)
        y_all[pl.ds(row0, bt), h * f:(h + 1) * f] = y

    @pl.when(step == pl.num_programs(0) - 1)
    def _finalize():
        yall = y_all[...]
        inv_n = 1.0 / btot
        mean = jnp.sum(yall, axis=0, keepdims=True) * inv_n
        var = jnp.maximum(
            jnp.sum(yall * yall, axis=0, keepdims=True) * inv_n - mean * mean,
            0.0)                                   # biased var, like PyTorch BN
        yhat = (yall - mean) * jax.lax.rsqrt(var + 1e-5)
        feat = jnp.maximum(yhat * gamma_ref[...] + beta_ref[...], 0.0)
        feat_ref[...] = feat
        feat_b = feat.astype(fcw_ref.dtype)
        for h in range(_NUM_HEADS):
            lg = jnp.dot(feat_b[:, h * f:(h + 1) * f], fcw_ref[h],
                         preferred_element_type=jnp.float32)
            logits_ref[:, h * ncp:(h + 1) * ncp] = lg + fcb_ref[h]


# ------------------------- host-side parameter packing -----------------------


def _stack_reduce_eval(params):
    """Fold BN (running stats) into the 1x1 conv: (8,C,F) bf16 w, (8,1,F) bias."""
    ws, bs = [], []
    for k in _RED_KEYS:
        r = params[k]
        scale = r["gamma"] * jax.lax.rsqrt(r["rv"] + 1e-5)
        ws.append(r["w"] * scale[None, :])
        bs.append((r["beta"] - r["rm"] * scale)[None, :])
    return jnp.stack(ws).astype(jnp.bfloat16), jnp.stack(bs).astype(jnp.float32)


def _stack_reduce_train(params):
    """Stacked conv weights (8,C,F) bf16 + concatenated BN gamma/beta (1,8F)."""
    w = jnp.stack([params[k]["w"] for k in _RED_KEYS]).astype(jnp.bfloat16)
    gamma = jnp.concatenate([params[k]["gamma"] for k in _RED_KEYS])[None, :]
    beta = jnp.concatenate([params[k]["beta"] for k in _RED_KEYS])[None, :]
    return w, gamma.astype(jnp.float32), beta.astype(jnp.float32)


def _stack_fc(params, ncp):
    """Stacked FC weights (8,F,ncPad) bf16 and biases (8,1,ncPad) f32,
    zero-padded so each head's class block is a multiple of 128 lanes."""
    ws, bs = [], []
    for k in _FC_KEYS:
        p = params[k]
        nc, f = p["w"].shape
        ws.append(jnp.zeros((f, ncp), jnp.float32).at[:, :nc].set(p["w"].T))
        bs.append(jnp.zeros((1, ncp), jnp.float32).at[:, :nc].set(p["b"][None, :]))
    return jnp.stack(ws).astype(jnp.bfloat16), jnp.stack(bs).astype(jnp.float32)


def _resident_spec(arr):
    nd = arr.ndim
    return pl.BlockSpec(arr.shape, lambda *_: (0,) * nd)


# ------------------------- backbone stand-in ---------------------------------


def backbone_standin(x, stem_w):
    """Deterministic stand-in for the ResNet-50 backbone + p1/p2/p3 branches.

    Emits channels-last, flattened feature maps:
      p1: (B, 12*4, C),  p2 == p3: (B, 24*8, C)
    (p2 and p3 are identical at init in the original module too, since the
    deep-copied branches share the same pretrained weights.)
    """
    xhwc = jnp.transpose(x, (0, 2, 3, 1))                      # (B, 96, 32, Cin)
    x4 = jax.lax.reduce_window(
        xhwc, 0.0, jax.lax.add, (1, 4, 4, 1), (1, 4, 4, 1), "VALID") / 16.0
    feat = jnp.maximum(jnp.einsum("bhwc,cd->bhwd", x4, stem_w), 0.0)  # (B,24,8,C)
    b, h, w, c = feat.shape
    p2 = feat.reshape(b, h * w, c)
    p3 = p2
    p1 = jax.lax.reduce_window(
        feat, -jnp.inf, jax.lax.max, (1, 2, 2, 1), (1, 2, 2, 1), "VALID")
    p1 = p1.reshape(b, (h // 2) * (w // 2), c)
    return p1, p2, p3


# ------------------------- forward --------------------------------------------


def mgn_forward(x, params, training=False, batch_tile=8):
    p1, p2, p3 = backbone_standin(x, params["stem_w"])
    # Activations to the MXU in bf16 (f32 accumulation); max-pool is exact in bf16.
    p1 = p1.astype(jnp.bfloat16)
    p2 = p2.astype(jnp.bfloat16)
    p3 = p3.astype(jnp.bfloat16)

    b, h1, c = p1.shape
    h23 = p2.shape[1]
    feats = params["reduction_g"]["w"].shape[1]

    # TODO(synk): at real MGN sizes raise batch_tile toward the largest block
    #             that fits ~half the per-generation VMEM budget (double-buffered).
    bt = batch_tile if (b % batch_tile == 0) else b
    grid = (b // bt,)

    p_specs = [
        pl.BlockSpec((bt, h1, c), lambda i: (i, 0, 0)),
        pl.BlockSpec((bt, h23, c), lambda i: (i, 0, 0)),
        pl.BlockSpec((bt, h23, c), lambda i: (i, 0, 0)),
    ]
    p_bytes = (p1.size + p2.size + p3.size) * 2   # bf16

    if not training:
        w_stack, bias_stack = _stack_reduce_eval(params)
        out_w = _NUM_HEADS * feats
        ce = pl.CostEstimate(
            flops=2 * b * _NUM_HEADS * c * feats,
            transcendentals=0,
            bytes_accessed=p_bytes + w_stack.size * 2 + bias_stack.size * 4
            + b * out_w * 4)
        predict = pl.pallas_call(
            _mgn_eval_kernel,
            out_shape=jax.ShapeDtypeStruct((b, out_w), jnp.float32),
            grid_spec=pltpu.PrefetchScalarGridSpec(
                num_scalar_prefetch=0,
                grid=grid,
                in_specs=p_specs + [_resident_spec(w_stack),
                                    _resident_spec(bias_stack)],
                out_specs=pl.BlockSpec((bt, out_w), lambda i: (i, 0)),
            ),
            compiler_params=pltpu.CompilerParams(
                dimension_semantics=("parallel",),
                vmem_limit_bytes=_VMEM_LIMIT),
            cost_estimate=ce,
        )(p1, p2, p3, w_stack, bias_stack)
        return predict

    # ---- training path: full-batch BN via resident accumulator + finalize ----
    w_stack, gamma, beta = _stack_reduce_train(params)
    nc = params["fc_id_2048_0"]["w"].shape[0]
    ncp = ((nc + 127) // 128) * 128          # lane-padded classes per head
    fcw, fcb = _stack_fc(params, ncp)
    out_f = _NUM_HEADS * feats
    out_l = _NUM_HEADS * ncp
    ce = pl.CostEstimate(
        flops=2 * b * _NUM_HEADS * c * feats + 2 * b * _NUM_HEADS * feats * ncp,
        transcendentals=0,
        bytes_accessed=p_bytes + w_stack.size * 2 + fcw.size * 2
        + (gamma.size + beta.size + fcb.size) * 4 + b * (out_f + out_l) * 4)

    feat, logits = pl.pallas_call(
        _mgn_train_kernel,
        out_shape=(jax.ShapeDtypeStruct((b, out_f), jnp.float32),
                   jax.ShapeDtypeStruct((b, out_l), jnp.float32)),
        grid_spec=pltpu.PrefetchScalarGridSpec(
            num_scalar_prefetch=0,
            grid=grid,
            in_specs=p_specs + [_resident_spec(w_stack),
                                _resident_spec(gamma), _resident_spec(beta),
                                _resident_spec(fcw), _resident_spec(fcb)],
            out_specs=(pl.BlockSpec((b, out_f), lambda i: (0, 0)),
                       pl.BlockSpec((b, out_l), lambda i: (0, 0))),
            scratch_shapes=[pltpu.VMEM((b, out_f), jnp.float32)]),
        compiler_params=pltpu.CompilerParams(
            dimension_semantics=("arbitrary",),   # sequential accumulate/finalize
            vmem_limit_bytes=_VMEM_LIMIT),
        cost_estimate=ce,
    )(p1, p2, p3, w_stack, gamma, beta, fcw, fcb)

    fg_p1 = feat[:, 0 * feats:1 * feats]
    fg_p2 = feat[:, 1 * feats:2 * feats]
    fg_p3 = feat[:, 2 * feats:3 * feats]
    ls = tuple(logits[:, i * ncp:i * ncp + nc] for i in range(_NUM_HEADS))
    # (fg_p1, fg_p2, fg_p3, l_p1, l_p2, l_p3, l0_p2, l1_p2, l0_p3, l1_p3, l2_p3)
    return (fg_p1, fg_p2, fg_p3) + ls


# ------------------------- parameter init ------------------------------------


def init_params(key, in_channels=3, backbone_c=128, feats=128, num_classes=8):
    """Synthetic parameters mirroring the module's __init__ shapes
    (backbone 2048 -> backbone_c, feats 256 -> feats)."""
    keys = list(jax.random.split(key, 32))
    it = iter(keys)

    def dim_reduce(k):
        kw, kg = jax.random.split(k)
        std = (2.0 / backbone_c) ** 0.5   # kaiming_normal_, fan_in, 1x1 conv
        return {
            "w": jax.random.normal(kw, (backbone_c, feats), jnp.float32) * std,
            "gamma": 1.0 + 0.02 * jax.random.normal(kg, (feats,), jnp.float32),
            "beta": jnp.zeros((feats,), jnp.float32),
            "rm": jnp.zeros((feats,), jnp.float32),   # BN running mean (init)
            "rv": jnp.ones((feats,), jnp.float32),    # BN running var  (init)
        }

    def fc(k):
        std = (2.0 / num_classes) ** 0.5  # kaiming_normal_, fan_out
        return {
            "w": jax.random.normal(k, (num_classes, feats), jnp.float32) * std,
            "b": jnp.zeros((num_classes,), jnp.float32),
        }

    params = {
        "stem_w": jax.random.normal(next(it), (in_channels, backbone_c),
                                    jnp.float32) * (2.0 / in_channels) ** 0.5,
    }
    for k in _RED_KEYS:
        params[k] = dim_reduce(next(it))
    for k in _FC_KEYS:
        params[k] = fc(next(it))
    return params


# ------------------------- main -----------------------------------------------

if __name__ == "__main__":
    key = jax.random.PRNGKey(0)
    kp, kx = jax.random.split(key)
    feats = 128
    num_classes = 8
    params = init_params(kp, in_channels=3, backbone_c=128, feats=feats,
                         num_classes=num_classes)

    # NCHW image input; 96x32 so the stand-in backbone yields the MGN geometry
    # p1=(B,C,12,4), p2=p3=(B,C,24,8) that the hard-coded pool sizes require.
    x = jax.random.normal(kx, (16, 3, 96, 32), jnp.float32)

    eval_fn = jax.jit(lambda xx, pp: mgn_forward(xx, pp, training=False))
    train_fn = jax.jit(lambda xx, pp: mgn_forward(xx, pp, training=True))

    # eval branch: `predict` = lane-dense concat of the 8 part features
    predict = jax.block_until_ready(eval_fn(x, params))
    assert predict.shape == (16, 8 * feats), predict.shape

    # training branch: (fg_p1, fg_p2, fg_p3, 8 x logits)
    train_out = jax.block_until_ready(train_fn(x, params))
    assert len(train_out) == 11
    assert train_out[0].shape == (16, feats)
    assert train_out[3].shape == (16, num_classes)

    print("KERNEL_OK")
</pallas_src>

<mosaic_0001>
module attributes {stable_mosaic.version = 11 : i64} {
  func.func @_mgn_eval_kernel(%arg0: i32, %arg1: memref<8x48x128xbf16, #tpu.memory_space<vmem>>, %arg2: memref<8x192x128xbf16, #tpu.memory_space<vmem>>, %arg3: memref<8x192x128xbf16, #tpu.memory_space<vmem>>, %arg4: memref<8x128x128xbf16, #tpu.memory_space<vmem>>, %arg5: memref<8x1x128xf32, #tpu.memory_space<vmem>>, %arg6: memref<8x1024xf32, #tpu.memory_space<vmem>>) attributes {dimension_semantics = [#tpu.dimension_semantics<parallel>], iteration_bounds = array<i64: 2>, scalar_prefetch = 0 : i64, scratch_operands = 0 : i64, tpu.core_type = #tpu.core_type<tc>, window_params = [{transform_indices = @transform_0, window_bounds = array<i64: 8, 48, 128>}, {transform_indices = @transform_1, window_bounds = array<i64: 8, 192, 128>}, {transform_indices = @transform_2, window_bounds = array<i64: 8, 192, 128>}, {pipeline_mode = #tpu.pipeline_mode<synchronous>, transform_indices = @transform_3, window_bounds = array<i64: 8, 128, 128>}, {pipeline_mode = #tpu.pipeline_mode<synchronous>, transform_indices = @transform_4, window_bounds = array<i64: 8, 1, 128>}, {transform_indices = @transform_5, window_bounds = array<i64: 8, 1024>}]} {
    %c0 = arith.constant 0 : index
    %c0_0 = arith.constant 0 : index
    %c0_1 = arith.constant 0 : index
    %0 = vector.load %arg1[%c0, %c0_0, %c0_1] : memref<8x48x128xbf16, #tpu.memory_space<vmem>>, vector<8x48x128xbf16>
    %c0_2 = arith.constant 0 : index
    %c0_3 = arith.constant 0 : index
    %c0_4 = arith.constant 0 : index
    %1 = vector.load %arg2[%c0_2, %c0_3, %c0_4] : memref<8x192x128xbf16, #tpu.memory_space<vmem>>, vector<8x192x128xbf16>
    %c0_5 = arith.constant 0 : index
    %c0_6 = arith.constant 0 : index
    %c0_7 = arith.constant 0 : index
    %2 = vector.load %arg3[%c0_5, %c0_6, %c0_7] : memref<8x192x128xbf16, #tpu.memory_space<vmem>>, vector<8x192x128xbf16>
    %cst = arith.constant dense<0xFF80> : vector<8x128xbf16>
    %3 = vector.multi_reduction <maximumf>, %0, %cst [1] : vector<8x48x128xbf16> to vector<8x128xbf16>
    %4 = vector.extract_strided_slice %1 {offsets = [0, 0, 0], sizes = [8, 96, 128], strides = [1, 1, 1]} : vector<8x192x128xbf16> to vector<8x96x128xbf16>
    %cst_8 = arith.constant dense<0xFF80> : vector<8x128xbf16>
    %5 = vector.multi_reduction <maximumf>, %4, %cst_8 [1] : vector<8x96x128xbf16> to vector<8x128xbf16>
    %6 = vector.extract_strided_slice %1 {offsets = [0, 96, 0], sizes = [8, 96, 128], strides = [1, 1, 1]} : vector<8x192x128xbf16> to vector<8x96x128xbf16>
    %cst_9 = arith.constant dense<0xFF80> : vector<8x128xbf16>
    %7 = vector.multi_reduction <maximumf>, %6, %cst_9 [1] : vector<8x96x128xbf16> to vector<8x128xbf16>
    %8 = vector.extract_strided_slice %2 {offsets = [0, 0, 0], sizes = [8, 64, 128], strides = [1, 1, 1]} : vector<8x192x128xbf16> to vector<8x64x128xbf16>
    %cst_10 = arith.constant dense<0xFF80> : vector<8x128xbf16>
    %9 = vector.multi_reduction <maximumf>, %8, %cst_10 [1] : vector<8x64x128xbf16> to vector<8x128xbf16>
    %10 = vector.extract_strided_slice %2 {offsets = [0, 64, 0], sizes = [8, 64, 128], strides = [1, 1, 1]} : vector<8x192x128xbf16> to vector<8x64x128xbf16>
    %cst_11 = arith.constant dense<0xFF80> : vector<8x128xbf16>
    %11 = vector.multi_reduction <maximumf>, %10, %cst_11 [1] : vector<8x64x128xbf16> to vector<8x128xbf16>
    %12 = vector.extract_strided_slice %2 {offsets = [0, 128, 0], sizes = [8, 64, 128], strides = [1, 1, 1]} : vector<8x192x128xbf16> to vector<8x64x128xbf16>
    %cst_12 = arith.constant dense<0xFF80> : vector<8x128xbf16>
    %13 = vector.multi_reduction <maximumf>, %12, %cst_12 [1] : vector<8x64x128xbf16> to vector<8x128xbf16>
    %14 = arith.maximumf %5, %7 : vector<8x128xbf16>
    %15 = arith.maximumf %9, %11 : vector<8x128xbf16>
    %16 = arith.maximumf %15, %13 : vector<8x128xbf16>
    %c0_13 = arith.constant 0 : index
    %c0_14 = arith.constant 0 : index
    %c0_15 = arith.constant 0 : index
    %17 = vector.load %arg4[%c0_13, %c0_14, %c0_15] : memref<8x128x128xbf16, #tpu.memory_space<vmem>>, vector<1x128x128xbf16>
    %18 = vector.shape_cast %17 : vector<1x128x128xbf16> to vector<128x128xbf16>
    %cst_16 = arith.constant dense<0.000000e+00> : vector<8x128xf32>
    %19 = tpu.matmul %3, %18, %cst_16 {dimension_numbers = #tpu.dot_dimension_numbers<[1], [0], [0], [1], [0, 0, 1, 1], [], []>} : vector<8x128xbf16>, vector<128x128xbf16>, vector<8x128xf32> -> vector<8x128xf32>
    %c0_17 = arith.constant 0 : index
    %c0_18 = arith.constant 0 : index
    %c0_19 = arith.constant 0 : index
    %20 = vector.load %arg5[%c0_17, %c0_18, %c0_19] : memref<8x1x128xf32, #tpu.memory_space<vmem>>, vector<1x1x128xf32>
    %21 = vector.shape_cast %20 : vector<1x1x128xf32> to vector<1x128xf32>
    %22 = vector.broadcast %21 : vector<1x128xf32> to vector<8x128xf32>
    %23 = arith.addf %19, %22 : vector<8x128xf32>
    %cst_20 = arith.constant 0.000000e+00 : f32
    %24 = vector.broadcast %cst_20 : f32 to vector<8x128xf32>
    %25 = arith.maximumf %23, %24 : vector<8x128xf32>
    %c0_21 = arith.constant 0 : index
    %c0_22 = arith.constant 0 : index
    %26 = vector.load %arg6[%c0_21, %c0_22] : memref<8x1024xf32, #tpu.memory_space<vmem>>, vector<8x128xf32>
    tpu.vector_store %arg6[%c0_21, %c0_22], %25 {strides = array<i32>} : memref<8x1024xf32, #tpu.memory_space<vmem>>, vector<8x128xf32>,
    %c1 = arith.constant 1 : index
    %c0_23 = arith.constant 0 : index
    %c0_24 = arith.constant 0 : index
    %27 = vector.load %arg4[%c1, %c0_23, %c0_24] : memref<8x128x128xbf16, #tpu.memory_space<vmem>>, vector<1x128x128xbf16>
    %28 = vector.shape_cast %27 : vector<1x128x128xbf16> to vector<128x128xbf16>
    %cst_25 = arith.constant dense<0.000000e+00> : vector<8x128xf32>
    %29 = tpu.matmul %14, %28, %cst_25 {dimension_numbers = #tpu.dot_dimension_numbers<[1], [0], [0], [1], [0, 0, 1, 1], [], []>} : vector<8x128xbf16>, vector<128x128xbf16>, vector<8x128xf32> -> vector<8x128xf32>
    %c1_26 = arith.constant 1 : index
    %c0_27 = arith.constant 0 : index
    %c0_28 = arith.constant 0 : index
    %30 = vector.load %arg5[%c1_26, %c0_27, %c0_28] : memref<8x1x128xf32, #tpu.memory_space<vmem>>, vector<1x1x128xf32>
    %31 = vector.shape_cast %30 : vector<1x1x128xf32> to vector<1x128xf32>
    %32 = vector.broadcast %31 : vector<1x128xf32> to vector<8x128xf32>
    %33 = arith.addf %29, %32 : vector<8x128xf32>
    %cst_29 = arith.constant 0.000000e+00 : f32
    %34 = vector.broadcast %cst_29 : f32 to vector<8x128xf32>
    %35 = arith.maximumf %33, %34 : vector<8x128xf32>
    %c0_30 = arith.constant 0 : index
    %c128 = arith.constant 128 : index
    %36 = vector.load %arg6[%c0_30, %c128] : memref<8x1024xf32, #tpu.memory_space<vmem>>, vector<8x128xf32>
    tpu.vector_store %arg6[%c0_30, %c128], %35 {strides = array<i32>} : memref<8x1024xf32, #tpu.memory_space<vmem>>, vector<8x128xf32>,
    %c2 = arith.constant 2 : index
    %c0_31 = arith.constant 0 : index
    %c0_32 = arith.constant 0 : index
    %37 = vector.load %arg4[%c2, %c0_31, %c0_32] : memref<8x128x128xbf16, #tpu.memory_space<vmem>>, vector<1x128x128xbf16>
    %38 = vector.shape_cast %37 : vector<1x128x128xbf16> to vector<128x128xbf16>
    %cst_33 = arith.constant dense<0.000000e+00> : vector<8x128xf32>
    %39 = tpu.matmul %16, %38, %cst_33 {dimension_numbers = #tpu.dot_dimension_numbers<[1], [0], [0], [1], [0, 0, 1, 1], [], []>} : vector<8x128xbf16>, vector<128x128xbf16>, vector<8x128xf32> -> vector<8x128xf32>
    %c2_34 = arith.constant 2 : index
    %c0_35 = arith.constant 0 : index
    %c0_36 = arith.constant 0 : index
    %40 = vector.load %arg5[%c2_34, %c0_35, %c0_36] : memref<8x1x128xf32, #tpu.memory_space<vmem>>, vector<1x1x128xf32>
    %41 = vector.shape_cast %40 : vector<1x1x128xf32> to vector<1x128xf32>
    %42 = vector.broadcast %41 : vector<1x128xf32> to vector<8x128xf32>
    %43 = arith.addf %39, %42 : vector<8x128xf32>
    %cst_37 = arith.constant 0.000000e+00 : f32
    %44 = vector.broadcast %cst_37 : f32 to vector<8x128xf32>
    %45 = arith.maximumf %43, %44 : vector<8x128xf32>
    %c0_38 = arith.constant 0 : index
    %c256 = arith.constant 256 : index
    %46 = vector.load %arg6[%c0_38, %c256] : memref<8x1024xf32, #tpu.memory_space<vmem>>, vector<8x128xf32>
    tpu.vector_store %arg6[%c0_38, %c256], %45 {strides = array<i32>} : memref<8x1024xf32, #tpu.memory_space<vmem>>, vector<8x128xf32>,
    %c3 = arith.constant 3 : index
    %c0_39 = arith.constant 0 : index
    %c0_40 = arith.constant 0 : index
    %47 = vector.load %arg4[%c3, %c0_39, %c0_40] : memref<8x128x128xbf16, #tpu.memory_space<vmem>>, vector<1x128x128xbf16>
    %48 = vector.shape_cast %47 : vector<1x128x128xbf16> to vector<128x128xbf16>
    %cst_41 = arith.constant dense<0.000000e+00> : vector<8x128xf32>
    %49 = tpu.matmul %5, %48, %cst_41 {dimension_numbers = #tpu.dot_dimension_numbers<[1], [0], [0], [1], [0, 0, 1, 1], [], []>} : vector<8x128xbf16>, vector<128x128xbf16>, vector<8x128xf32> -> vector<8x128xf32>
    %c3_42 = arith.constant 3 : index
    %c0_43 = arith.constant 0 : index
    %c0_44 = arith.constant 0 : index
    %50 = vector.load %arg5[%c3_42, %c0_43, %c0_44] : memref<8x1x128xf32, #tpu.memory_space<vmem>>, vector<1x1x128xf32>
    %51 = vector.shape_cast %50 : vector<1x1x128xf32> to vector<1x128xf32>
    %52 = vector.broadcast %51 : vector<1x128xf32> to vector<8x128xf32>
    %53 = arith.addf %49, %52 : vector<8x128xf32>
    %cst_45 = arith.constant 0.000000e+00 : f32
    %54 = vector.broadcast %cst_45 : f32 to vector<8x128xf32>
    %55 = arith.maximumf %53, %54 : vector<8x128xf32>
    %c0_46 = arith.constant 0 : index
    %c384 = arith.constant 384 : index
    %56 = vector.load %arg6[%c0_46, %c384] : memref<8x1024xf32, #tpu.memory_space<vmem>>, vector<8x128xf32>
    tpu.vector_store %arg6[%c0_46, %c384], %55 {strides = array<i32>} : memref<8x1024xf32, #tpu.memory_space<vmem>>, vector<8x128xf32>,
    %c4 = arith.constant 4 : index
    %c0_47 = arith.constant 0 : index
    %c0_48 = arith.constant 0 : index
    %57 = vector.load %arg4[%c4, %c0_47, %c0_48] : memref<8x128x128xbf16, #tpu.memory_space<vmem>>, vector<1x128x128xbf16>
    %58 = vector.shape_cast %57 : vector<1x128x128xbf16> to vector<128x128xbf16>
    %cst_49 = arith.constant dense<0.000000e+00> : vector<8x128xf32>
    %59 = tpu.matmul %7, %58, %cst_49 {dimension_numbers = #tpu.dot_dimension_numbers<[1], [0], [0], [1], [0, 0, 1, 1], [], []>} : vector<8x128xbf16>, vector<128x128xbf16>, vector<8x128xf32> -> vector<8x128xf32>
    %c4_50 = arith.constant 4 : index
    %c0_51 = arith.constant 0 : index
    %c0_52 = arith.constant 0 : index
    %60 = vector.load %arg5[%c4_50, %c0_51, %c0_52] : memref<8x1x128xf32, #tpu.memory_space<vmem>>, vector<1x1x128xf32>
    %61 = vector.shape_cast %60 : vector<1x1x128xf32> to vector<1x128xf32>
    %62 = vector.broadcast %61 : vector<1x128xf32> to vector<8x128xf32>
    %63 = arith.addf %59, %62 : vector<8x128xf32>
    %cst_53 = arith.constant 0.000000e+00 : f32
    %64 = vector.broadcast %cst_53 : f32 to vector<8x128xf32>
    %65 = arith.maximumf %63, %64 : vector<8x128xf32>
    %c0_54 = arith.constant 0 : index
    %c512 = arith.constant 512 : index
    %66 = vector.load %arg6[%c0_54, %c512] : memref<8x1024xf32, #tpu.memory_space<vmem>>, vector<8x128xf32>
    tpu.vector_store %arg6[%c0_54, %c512], %65 {strides = array<i32>} : memref<8x1024xf32, #tpu.memory_space<vmem>>, vector<8x128xf32>,
    %c5 = arith.constant 5 : index
    %c0_55 = arith.constant 0 : index
    %c0_56 = arith.constant 0 : index
    %67 = vector.load %arg4[%c5, %c0_55, %c0_56] : memref<8x128x128xbf16, #tpu.memory_space<vmem>>, vector<1x128x128xbf16>
    %68 = vector.shape_cast %67 : vector<1x128x128xbf16> to vector<128x128xbf16>
    %cst_57 = arith.constant dense<0.000000e+00> : vector<8x128xf32>
    %69 = tpu.matmul %9, %68, %cst_57 {dimension_numbers = #tpu.dot_dimension_numbers<[1], [0], [0], [1], [0, 0, 1, 1], [], []>} : vector<8x128xbf16>, vector<128x128xbf16>, vector<8x128xf32> -> vector<8x128xf32>
    %c5_58 = arith.constant 5 : index
    %c0_59 = arith.constant 0 : index
    %c0_60 = arith.constant 0 : index
    %70 = vector.load %arg5[%c5_58, %c0_59, %c0_60] : memref<8x1x128xf32, #tpu.memory_space<vmem>>, vector<1x1x128xf32>
    %71 = vector.shape_cast %70 : vector<1x1x128xf32> to vector<1x128xf32>
    %72 = vector.broadcast %71 : vector<1x128xf32> to vector<8x128xf32>
    %73 = arith.addf %69, %72 : vector<8x128xf32>
    %cst_61 = arith.constant 0.000000e+00 : f32
    %74 = vector.broadcast %cst_61 : f32 to vector<8x128xf32>
    %75 = arith.maximumf %73, %74 : vector<8x128xf32>
    %c0_62 = arith.constant 0 : index
    %c640 = arith.constant 640 : index
    %76 = vector.load %arg6[%c0_62, %c640] : memref<8x1024xf32, #tpu.memory_space<vmem>>, vector<8x128xf32>
    tpu.vector_store %arg6[%c0_62, %c640], %75 {strides = array<i32>} : memref<8x1024xf32, #tpu.memory_space<vmem>>, vector<8x128xf32>,
    %c6 = arith.constant 6 : index
    %c0_63 = arith.constant 0 : index
    %c0_64 = arith.constant 0 : index
    %77 = vector.load %arg4[%c6, %c0_63, %c0_64] : memref<8x128x128xbf16, #tpu.memory_space<vmem>>, vector<1x128x128xbf16>
    %78 = vector.shape_cast %77 : vector<1x128x128xbf16> to vector<128x128xbf16>
    %cst_65 = arith.constant dense<0.000000e+00> : vector<8x128xf32>
    %79 = tpu.matmul %11, %78, %cst_65 {dimension_numbers = #tpu.dot_dimension_numbers<[1], [0], [0], [1], [0, 0, 1, 1], [], []>} : vector<8x128xbf16>, vector<128x128xbf16>, vector<8x128xf32> -> vector<8x128xf32>
    %c6_66 = arith.constant 6 : index
    %c0_67 = arith.constant 0 : index
    %c0_68 = arith.constant 0 : index
    %80 = vector.load %arg5[%c6_66, %c0_67, %c0_68] : memref<8x1x128xf32, #tpu.memory_space<vmem>>, vector<1x1x128xf32>
    %81 = vector.shape_cast %80 : vector<1x1x128xf32> to vector<1x128xf32>
    %82 = vector.broadcast %81 : vector<1x128xf32> to vector<8x128xf32>
    %83 = arith.addf %79, %82 : vector<8x128xf32>
    %cst_69 = arith.constant 0.000000e+00 : f32
    %84 = vector.broadcast %cst_69 : f32 to vector<8x128xf32>
    %85 = arith.maximumf %83, %84 : vector<8x128xf32>
    %c0_70 = arith.constant 0 : index
    %c768 = arith.constant 768 : index
    %86 = vector.load %arg6[%c0_70, %c768] : memref<8x1024xf32, #tpu.memory_space<vmem>>, vector<8x128xf32>
    tpu.vector_store %arg6[%c0_70, %c768], %85 {strides = array<i32>} : memref<8x1024xf32, #tpu.memory_space<vmem>>, vector<8x128xf32>,
    %c7 = arith.constant 7 : index
    %c0_71 = arith.constant 0 : index
    %c0_72 = arith.constant 0 : index
    %87 = vector.load %arg4[%c7, %c0_71, %c0_72] : memref<8x128x128xbf16, #tpu.memory_space<vmem>>, vector<1x128x128xbf16>
    %88 = vector.shape_cast %87 : vector<1x128x128xbf16> to vector<128x128xbf16>
    %cst_73 = arith.constant dense<0.000000e+00> : vector<8x128xf32>
    %89 = tpu.matmul %13, %88, %cst_73 {dimension_numbers = #tpu.dot_dimension_numbers<[1], [0], [0], [1], [0, 0, 1, 1], [], []>} : vector<8x128xbf16>, vector<128x128xbf16>, vector<8x128xf32> -> vector<8x128xf32>
    %c7_74 = arith.constant 7 : index
    %c0_75 = arith.constant 0 : index
    %c0_76 = arith.constant 0 : index
    %90 = vector.load %arg5[%c7_74, %c0_75, %c0_76] : memref<8x1x128xf32, #tpu.memory_space<vmem>>, vector<1x1x128xf32>
    %91 = vector.shape_cast %90 : vector<1x1x128xf32> to vector<1x128xf32>
    %92 = vector.broadcast %91 : vector<1x128xf32> to vector<8x128xf32>
    %93 = arith.addf %89, %92 : vector<8x128xf32>
    %cst_77 = arith.constant 0.000000e+00 : f32
    %94 = vector.broadcast %cst_77 : f32 to vector<8x128xf32>
    %95 = arith.maximumf %93, %94 : vector<8x128xf32>
    %c0_78 = arith.constant 0 : index
    %c896 = arith.constant 896 : index
    %96 = vector.load %arg6[%c0_78, %c896] : memref<8x1024xf32, #tpu.memory_space<vmem>>, vector<8x128xf32>
    tpu.vector_store %arg6[%c0_78, %c896], %95 {strides = array<i32>} : memref<8x1024xf32, #tpu.memory_space<vmem>>, vector<8x128xf32>,
    return
  }
  func.func @transform_0(%arg0: i32) -> (i32, i32, i32) {
    %c0_i32 = arith.constant 0 : i32
    %c0_i32_0 = arith.constant 0 : i32
    %c0_i32_1 = arith.constant 0 : i32
    return %arg0, %c0_i32, %c0_i32_0 : i32, i32, i32
  }
  func.func @transform_1(%arg0: i32) -> (i32, i32, i32) {
    %c0_i32 = arith.constant 0 : i32
    %c0_i32_0 = arith.constant 0 : i32
    %c0_i32_1 = arith.constant 0 : i32
    return %arg0, %c0_i32, %c0_i32_0 : i32, i32, i32
  }
  func.func @transform_2(%arg0: i32) -> (i32, i32, i32) {
    %c0_i32 = arith.constant 0 : i32
    %c0_i32_0 = arith.constant 0 : i32
    %c0_i32_1 = arith.constant 0 : i32
    return %arg0, %c0_i32, %c0_i32_0 : i32, i32, i32
  }
  func.func @transform_3(%arg0: i32) -> (i32, i32, i32) {
    %c0_i32 = arith.constant 0 : i32
    %c0_i32_0 = arith.constant 0 : i32
    %c0_i32_1 = arith.constant 0 : i32
    %c0_i32_2 = arith.constant 0 : i32
    return %c0_i32, %c0_i32_0, %c0_i32_1 : i32, i32, i32
  }
  func.func @transform_4(%arg0: i32) -> (i32, i32, i32) {
    %c0_i32 = arith.constant 0 : i32
    %c0_i32_0 = arith.constant 0 : i32
    %c0_i32_1 = arith.constant 0 : i32
    %c0_i32_2 = arith.constant 0 : i32
    return %c0_i32, %c0_i32_0, %c0_i32_1 : i32, i32, i32
  }
  func.func @transform_5(%arg0: i32) -> (i32, i32) {
    %c0_i32 = arith.constant 0 : i32
    %c0_i32_0 = arith.constant 0 : i32
    return %arg0, %c0_i32 : i32, i32
  }
}

</mosaic_0001>

<bundles_post_ra>
// kernel: _lambda_.1
= control target key start
LH: loop header
LB: loop body
LE: loop exit
PB: predicated region body
PF: predicated region fallthrough
CT: control target
= control target key end

     0   :  { %10 = vsyncpa [#allocation3], 0  ;;  %s5879_s0 = inlined_call_operand.vmem [shape: bf16[16,48,128], index: 0, kind: input, shape index: {}]   ;;  %s5880_s1 = inlined_call_operand.vmem [shape: bf16[16,192,128], index: 1, kind: input, shape index: {}, may-alias: {1,2}]   ;;  %s5881_s2 = inlined_call_operand.vmem [shape: bf16[16,192,128], index: 2, kind: input, shape index: {}, may-alias: {1,2}]   ;;  %s5882_s3 = inlined_call_operand.vmem [shape: bf16[8,128,128], index: 3, kind: input, shape index: {}]   ;;  %s5883_s4 = inlined_call_operand.vmem [shape: f32[8,1,128], index: 4, kind: input, shape index: {}]   ;;  %s5884_s5 = inlined_call_operand.hbm [shape: f32[16,1024], index: 5, kind: output, shape index: {}]  }
   0x1   :  { %12 = vsyncpa [#allocation3 + $0x1], 0  ;;  %s4978_s18 = smov 0   ;;  %s4980_s19 = smov 0  }
   0x2   :  { %s4982_s20 = smov 0   ;;  %s4984_s21 = smov 0  }
   0x3 LB: > { %s4999_s22 = sadd.s32 4294967295, %s4943_s21   ;;  %s3902_s23 = sadd.s32 4294967294, %s4943_s21   ;;  %s4943_s21 = sphi %s4984_s21, %s5890_s21   ;;  %s4939_s20 = sphi %s4982_s20, %s5889_s20   ;;  %s4935_s19 = sphi %s4980_s19, %s5888_s19   ;;  %s4931_s18 = sphi %s4978_s18, %s5887_s18  }
   0x4   : > { %s5003_s24 = sadd.s32 1, %s4943_s21   ;;  %s145_s25 = sadd.s32 1, %s4939_s20 }
   0x5   : > { %s142_s26 = ssub.s32 %s4943_s21, %s5003_s24  ;;  %p155_p0 = scmp.ne.s32.totalorder %s4939_s20, %s4935_s19 }
   0x6   : > { %p143_p1 = scmp.eq.s32.totalorder %s142_s26, 0  ;;  %p156_p2 = scmp.eq.s32.totalorder %s4999_s22, 1 }
   0x7   : > { %p161_p3 = scmp.ne.s32.totalorder %s4935_s19, %s4931_s18  ;;  %p162_p4 = scmp.eq.s32.totalorder %s3902_s23, 1 }
   0x8   : > { %s5014_s27 = scalar_select %p143_p1, %s4939_s20, %s145_s25  }
   0x9   : > { %p5016_p5 = por %p156_p2, %p155_p0  ;;  %p5020_p6 = por %p162_p4, %p161_p3 }
   0xa   : > { %p3905_p7 = scmp.ge.s32.totalorder %s4943_s21, 1  ;;  %p216_p8 = scmp.lt.s32.totalorder %s4943_s21, 3 }
   0xc   : > { %p217_p9 = pnand %p3905_p7, %p216_p8 }
   0xd   : > { %v4601_v0 = vld [vmem:[%s5882_s3] sm:$0xff] (!%p217_p9)   ;;  %v4945_v1 = vmov (!%p217_p9), 0.0   ;;  %v4603_v3 = vld [vmem:[%s5882_s3 + $0x8] sm:$0xff] (!%p217_p9)   ;;  %vm4946_vm0 = vmmov (!%p217_p9), 0   ;;  %s3907_s11 = sshll.u32 (!%p217_p9), %s4999_s22, 3  ;;  %v4605_v5 = vld [vmem:[%s5882_s3 + $0x10] sm:$0xff] (!%p217_p9)  }
   0xe   : > { %220 = sbr.rel (%p217_p9) target bundleno = 600 (0x258), region = 40  ;;  %4398 = vmatprep.subr.bf16.mxu0 (!%p217_p9), %v4945_v1  ;;  %4418 = vmatprep.subr.bf16.mxu1 (!%p217_p9), %v4945_v1  ;;  %v4602_v2 = vld [vmem:[%s5882_s3 + $0x40] sm:$0xff] (!%p217_p9)   ;;  %v4604_v4 = vld [vmem:[%s5882_s3 + $0x48] sm:$0xff] (!%p217_p9)   ;;  %p258_p10 = scmp.lt.s32.totalorder (!%p217_p9), %s3907_s11, 15  ;;  %v4606_v6 = vld [vmem:[%s5882_s3 + $0x50] sm:$0xff] (!%p217_p9)   ;;  %vm2718_vm1 = vcmask (!%p217_p9), 1041409  }
   0xf   : > { %4399 = vmatpush3.bf16.msra.mxu0 (!%p217_p9), %v4601_v0  ;;  %4414 = vmatprep.mubr.msk.bf16.mxu0 (!%p217_p9), %vm4946_vm0, %v4945_v1  ;;  %v4607_v7 = vld [vmem:[%s5882_s3 + $0x18] sm:$0xff] (!%p217_p9)   ;;  %v4609_v9 = vld [vmem:[%s5882_s3 + $0x20] sm:$0xff] (!%p217_p9)   ;;  %v4611_v11 = vld [vmem:[%s5882_s3 + $0x28] sm:$0xff] (!%p217_p9)   ;;  %vm2720_vm2 = vcmask (!%p217_p9), 1042434   ;;  %vm2722_vm3 = vcmask (!%p217_p9), 1043459   ;;  %vm2724_vm4 = vcmask (!%p217_p9), 1044484  }
  0x10   : > { %4400 = vmatprep.subr.bf16.mxu0 (!%p217_p9), %v4945_v1  ;;  %4419 = vmatpush3.bf16.msra.mxu1 (!%p217_p9), %v4602_v2  ;;  %v4608_v8 = vld [vmem:[%s5882_s3 + $0x58] sm:$0xff] (!%p217_p9)   ;;  %v4610_v10 = vld [vmem:[%s5882_s3 + $0x60] sm:$0xff] (!%p217_p9)   ;;  %v4612_v12 = vld [vmem:[%s5882_s3 + $0x68] sm:$0xff] (!%p217_p9)   ;;  %vm2726_vm5 = vcmask (!%p217_p9), 1045509   ;;  %vm2728_vm6 = vcmask (!%p217_p9), 1046534   ;;  %vm2730_vm7 = vcmask (!%p217_p9), 1047559  }
  0x11   : > { %4420 = vmatprep.subr.bf16.mxu1 (!%p217_p9), %v4945_v1  ;;  %4434 = vmatprep.mubr.msk.bf16.mxu1 (!%p217_p9), %vm4946_vm0, %v4945_v1  ;;  %v4613_v13 = vld [vmem:[%s5882_s3 + $0x30] sm:$0xff] (!%p217_p9)   ;;  %v4615_v15 = vld [vmem:[%s5882_s3 + $0x38] sm:$0xff] (!%p217_p9)   ;;  %s4325_s17 = sshll.u32 (!%p217_p9), %s4999_s22, 10 }
  0x12   : > { %v4614_v14 = vld [vmem:[%s5882_s3 + $0x70] sm:$0xff] (!%p217_p9)   ;;  %v4616_v16 = vld [vmem:[%s5882_s3 + $0x78] sm:$0xff] (!%p217_p9)   ;;  %s5834_s26 = scalar_lea.hbm (!%p217_p9), %s5884_s5, %s4325_s17 }
  0x13   : > { %4401 = vmatpush3.bf16.msra.mxu0 (!%p217_p9), %v4603_v3 }
  0x14   : > { %4402 = vmatprep.subr.bf16.mxu0 (!%p217_p9), %v4945_v1  ;;  %4421 = vmatpush3.bf16.msra.mxu1 (!%p217_p9), %v4604_v4 }
  0x15   : > { %4422 = vmatprep.subr.bf16.mxu1 %v4945_v1  ;;  %s5892_s11 = smov (!%p258_p10, %s3907_s11), 15 }
  0x16   : > { %s4558_s6 = smul.u32 24, %s5892_s11 }
  0x17   : > { %4403 = vmatpush3.bf16.msra.mxu0 %v4605_v5  ;;  %s4559_s12 = smul.u32 96, %s5892_s11 }
  0x18   : > { %4404 = vmatprep.subr.bf16.mxu0 %v4945_v1  ;;  %4423 = vmatpush3.bf16.msra.mxu1 %v4606_v6  ;;  %s5076_s14 = scalar_lea.vmem %s5879_s0, %s4558_s6  ;;  %s4947_s6 = smov [#allocation2]  }
  0x19   : > { %4424 = vmatprep.subr.bf16.mxu1 %v4945_v1  ;;  %v4617_v17 = vld [vmem:[%s5076_s14] sm:$0xff]   ;;  %v4618_v18 = vld [vmem:[%s5076_s14 + $0x8] sm:$0xff]   ;;  %v4619_v19 = vld [vmem:[%s5076_s14 + $0x10] sm:$0xff]   ;;  %s5132_s16 = scalar_lea.vmem %s5880_s1, %s4559_s12  ;;  %s5288_s15 = scalar_lea.vmem %s5881_s2, %s4559_s12 }
  0x1a   : > { %v4620_v20 = vld [vmem:[%s5076_s14 + $0x18] sm:$0xff]   ;;  %v4621_v21 = vld [vmem:[%s5076_s14 + $0x20] sm:$0xff]   ;;  %v4622_v22 = vld [vmem:[%s5076_s14 + $0x28] sm:$0xff]   ;;  %v855_v26 = vmax.bf16 %v4618_v18, %v4617_v17  ;;  %s4885_s7 = sshll.u32 %s4947_s6, 4  ;;  %s4886_s7 = int_to_ptr.vmem [resolvable:$false] %s4885_s7 }
  0x1b   : > { %4405 = vmatpush3.bf16.msra.mxu0 %v4607_v7  ;;  %v4623_v23 = vld [vmem:[%s5076_s14 + $0x30] sm:$0xff]   ;;  %v4624_v24 = vld [vmem:[%s5076_s14 + $0x38] sm:$0xff]   ;;  %v4625_v25 = vld [vmem:[%s5076_s14 + $0x40] sm:$0xff]   ;;  %v867_v30 = vmax.bf16 %v4621_v21, %v4620_v20  ;;  %s4887_s8 = scalar_lea.vmem %s4886_s7, 2048 }
  0x1c   : > { %4406 = vmatprep.subr.bf16.mxu0 %v4945_v1  ;;  %4425 = vmatpush3.bf16.msra.mxu1 %v4608_v8  ;;  %v4626_v27 = vld [vmem:[%s5076_s14 + $0x48] sm:$0xff]   ;;  %v4627_v28 = vld [vmem:[%s5076_s14 + $0x50] sm:$0xff]   ;;  %v4628_v29 = vld [vmem:[%s5076_s14 + $0x58] sm:$0xff]   ;;  %v856_v34 = vmax.bf16 %v4619_v19, %v855_v26  ;;  %v879_v35 = vmax.bf16 %v4624_v24, %v4623_v23 }
  0x1d   : > { %4426 = vmatprep.subr.bf16.mxu1 %v4945_v1  ;;  %v4629_v31 = vld [vmem:[%s5076_s14 + $0x60] sm:$0xff]   ;;  %v4630_v32 = vld [vmem:[%s5076_s14 + $0x68] sm:$0xff]   ;;  %v4631_v33 = vld [vmem:[%s5076_s14 + $0x70] sm:$0xff]   ;;  %v868_v39 = vmax.bf16 %v4622_v22, %v867_v30  ;;  %v891_v40 = vmax.bf16 %v4627_v28, %v4626_v27 }
  0x1e   : > { %v4632_v36 = vld [vmem:[%s5076_s14 + $0x78] sm:$0xff]   ;;  %v4633_v37 = vld [vmem:[%s5076_s14 + $0x80] sm:$0xff]   ;;  %v4634_v38 = vld [vmem:[%s5076_s14 + $0x88] sm:$0xff]   ;;  %v857_v41 = vunpack.i.l.bf16 %v856_v34  ;;  %v858_v42 = vunpack.i.h.bf16 %v856_v34  ;;  %v880_v43 = vmax.bf16 %v4625_v25, %v879_v35  ;;  %v903_v44 = vmax.bf16 %v4630_v32, %v4629_v31 }
  0x1f   : > { %4407 = vmatpush3.bf16.msra.mxu0 %v4609_v9  ;;  %v4635_v45 = vld [vmem:[%s5076_s14 + $0x90] sm:$0xff]   ;;  %v4636_v46 = vld [vmem:[%s5076_s14 + $0x98] sm:$0xff]   ;;  %v4638_v47 = vld [vmem:[%s5076_s14 + $0xa8] sm:$0xff]   ;;  %v869_v48 = vunpack.i.l.bf16 %v868_v39  ;;  %v870_v49 = vunpack.i.h.bf16 %v868_v39  ;;  %v892_v50 = vmax.bf16 %v4628_v29, %v891_v40  ;;  %v915_v51 = vmax.bf16 %v4633_v37, %v4632_v36 }
  0x20   : > { %4408 = vmatprep.subr.bf16.mxu0 %v4945_v1  ;;  %4427 = vmatpush3.bf16.msra.mxu1 %v4610_v10  ;;  %v4639_v52 = vld [vmem:[%s5076_s14 + $0xb0] sm:$0xff]   ;;  %v859_v53 = vmax.f32 %v857_v41, %v858_v42  ;;  %v881_v54 = vunpack.i.l.bf16 %v880_v43  ;;  %v882_v55 = vunpack.i.h.bf16 %v880_v43  ;;  %v904_v56 = vmax.bf16 %v4631_v33, %v903_v44  ;;  %v4637_v61 = vld [vmem:[%s5076_s14 + $0xa0] sm:$0xff]   ;;  %v4640_v3 = vld [vmem:[%s5076_s14 + $0xb8] sm:$0xff]  }
  0x21   : > { %4428 = vmatprep.subr.bf16.mxu1 %v4945_v1  ;;  %v871_v57 = vmax.f32 %v869_v48, %v870_v49  ;;  %v893_v58 = vunpack.i.l.bf16 %v892_v50  ;;  %v894_v59 = vunpack.i.h.bf16 %v892_v50  ;;  %v916_v60 = vmax.bf16 %v4634_v38, %v915_v51 }
  0x22   : > { %v860_v62 = vrot.slane %v859_v53, 4  ;;  %v883_v63 = vmax.f32 %v881_v54, %v882_v55  ;;  %v905_v0 = vunpack.i.l.bf16 %v904_v56  ;;  %v906_v2 = vunpack.i.h.bf16 %v904_v56 }
  0x23   : > { %4409 = vmatpush3.bf16.msra.mxu0 %v4611_v11  ;;  %v872_v4 = vrot.slane %v871_v57, 4  ;;  %v895_v5 = vmax.f32 %v893_v58, %v894_v59  ;;  %v917_v6 = vunpack.i.l.bf16 %v916_v60  ;;  %v918_v7 = vunpack.i.h.bf16 %v916_v60 }
  0x24   : > { %4410 = vmatprep.subr.bf16.mxu0 %v4945_v1  ;;  %4429 = vmatpush3.bf16.msra.mxu1 %v4612_v12  ;;  %v861_v8 = vmax.f32 %v859_v53, %v860_v62  ;;  %v884_v9 = vrot.slane %v883_v63, 4  ;;  %v907_v10 = vmax.f32 %v905_v0, %v906_v2  ;;  %v927_v11 = vmax.bf16 %v4636_v46, %v4635_v45 }
  0x25   : > { %4430 = vmatprep.subr.bf16.mxu1 %v4945_v1  ;;  %v873_v12 = vmax.f32 %v871_v57, %v872_v4 }
  0x26   : > { %v885_v17 = vmax.f32 %v883_v63, %v884_v9  ;;  %v908_v18 = vrot.slane %v907_v10, 4  ;;  %v928_v19 = vmax.bf16 %v4637_v61, %v927_v11 }
  0x27   : > { %4411 = vmatpush3.bf16.msra.mxu0 %v4613_v13  ;;  %v896_v13 = vrot.slane %v895_v5, 4  ;;  %v874_v20 = vrot.slane %v873_v12, 2 }
  0x28   : > { %4412 = vmatprep.subr.bf16.mxu0 %v4945_v1  ;;  %4431 = vmatpush3.bf16.msra.mxu1 %v4614_v14  ;;  %v919_v14 = vmax.f32 %v917_v6, %v918_v7  ;;  %v886_v25 = vrot.slane %v885_v17, 2  ;;  %v909_v26 = vmax.f32 %v907_v10, %v908_v18  ;;  %v929_v27 = vunpack.i.l.bf16 %v928_v19 }
  0x29   : > { %4432 = vmatprep.subr.bf16.mxu1 %v4945_v1  ;;  %v897_v21 = vmax.f32 %v895_v5, %v896_v13  ;;  %v875_v28 = vmax.f32 %v873_v12, %v874_v20  ;;  %v930_v31 = vunpack.i.h.bf16 %v928_v19 }
  0x2a   : > { %v920_v22 = vrot.slane %v919_v14, 4  ;;  %v887_v33 = vmax.f32 %v885_v17, %v886_v25  ;;  %v910_v34 = vrot.slane %v909_v26, 2  ;;  %v4641_v25 = vld [vmem:[%s5882_s3 + $0x80] sm:$0xff]  }
  0x2b   : > { %4413 = vmatpush3.bf16.msra.mxu0 %v4615_v15  ;;  %v939_v15 = vmax.bf16 %v4639_v52, %v4638_v47  ;;  %v898_v29 = vrot.slane %v897_v21, 2  ;;  %v876_v36 = vrot.slane %v875_v28, 1  ;;  %v931_v39 = vmax.f32 %v929_v27, %v930_v31  ;;  %v4649_v31 = vld [vmem:[%s5132_s16 + $0x68] sm:$0xff]  }
  0x2c   : > { %4433 = vmatpush3.bf16.msra.mxu1 %v4616_v16  ;;  %4438 = vmatprep.subr.bf16.mxu0 %v4945_v1  ;;  %v862_v16 = vrot.slane %v861_v8, 2  ;;  %v921_v30 = vmax.f32 %v919_v14, %v920_v22  ;;  %v888_v41 = vrot.slane %v887_v33, 1  ;;  %v911_v42 = vmax.f32 %v909_v26, %v910_v34 }
  0x2d   : > { %4458 = vmatprep.subr.bf16.mxu1 %v4945_v1  ;;  %v940_v23 = vmax.bf16 %v4640_v3, %v939_v15  ;;  %v899_v37 = vmax.f32 %v897_v21, %v898_v29  ;;  %v877_v44 = vmax.f32 %v875_v28, %v876_v36  ;;  %v932_v47 = vrot.slane %v931_v39, 4  ;;  %v4642_v28 = vld [vmem:[%s5132_s16] sm:$0xff]   ;;  %v4643_v29 = vld [vmem:[%s5132_s16 + $0x8] sm:$0xff]  }
  0x2e   : > { %v863_v24 = vmax.f32 %v861_v8, %v862_v16  ;;  %v922_v38 = vrot.slane %v921_v30, 2  ;;  %v889_v49 = vmax.f32 %v887_v33, %v888_v41  ;;  %v912_v50 = vrot.slane %v911_v42, 1  ;;  %v4650_v33 = vld [vmem:[%s5132_s16 + $0x70] sm:$0xff]   ;;  %v4652_v41 = vld [vmem:[%s5132_s16 + $0x80] sm:$0xff]  }
  0x2f   : > { %v941_v35 = vunpack.i.l.bf16 %v940_v23  ;;  %v942_v43 = vunpack.i.h.bf16 %v940_v23  ;;  %v900_v45 = vrot.slane %v899_v37, 1  ;;  %v878_v52 = vpack.i.bf16 %v877_v44, %v877_v44 }
  0x30   : > { %v864_v32 = vrot.slane %v863_v24, 1  ;;  %v923_v46 = vmax.f32 %v921_v30, %v922_v38  ;;  %v933_v55 = vmax.f32 %v931_v39, %v932_v47  ;;  %v890_v56 = vpack.i.bf16 %v889_v49, %v889_v49  ;;  %v4648_v30 = vld [vmem:[%s5132_s16 + $0x60] sm:$0xff]  }
  0x31   : > { %v943_v51 = vmax.f32 %v941_v35, %v942_v43  ;;  %v901_v53 = vmax.f32 %v899_v37, %v900_v45  ;;  %v913_v57 = vmax.f32 %v911_v42, %v912_v50  ;;  %v2711_v63 = vunpack.c.l.b16 %v878_v52  ;;  %v4645_v35 = vld [vmem:[%s5132_s16 + $0x18] sm:$0xff]   ;;  %v4646_v39 = vld [vmem:[%s5132_s16 + $0x20] sm:$0xff]   ;;  %v4647_v43 = vld [vmem:[%s5132_s16 + $0x28] sm:$0xff]  }
  0x32   : > { %v865_v40 = vmax.f32 %v863_v24, %v864_v32  ;;  %v924_v54 = vrot.slane %v923_v46, 1  ;;  %v934_v62 = vrot.slane %v933_v55, 2  ;;  %v2712_v3 = vunpack.c.l.b16 %v890_v56  ;;  %v4644_v32 = vld [vmem:[%s5132_s16 + $0x10] sm:$0xff]   ;;  %v4651_v37 = vld [vmem:[%s5132_s16 + $0x78] sm:$0xff]   ;;  %v4653_v45 = vld [vmem:[%s5132_s16 + $0x88] sm:$0xff]  }
  0x33   : > { %v944_v58 = vrot.slane %v943_v51, 4  ;;  %v902_v60 = vpack.i.bf16 %v901_v53, %v901_v53  ;;  %v914_v0 = vpack.i.bf16 %v913_v57, %v913_v57  ;;  %v1239_v34 = vmax.bf16 %v4643_v29, %v4642_v28  ;;  %v4654_v50 = vld [vmem:[%s5132_s16 + $0xc0] sm:$0xff]   ;;  %v4675_v29 = vld [vmem:[%s5132_s16 + $0x1f8] sm:$0xff]  }
  0x34   : > { %v866_v48 = vpack.i.bf16 %v865_v40, %v865_v40  ;;  %v925_v61 = vmax.f32 %v923_v46, %v924_v54  ;;  %v935_v5 = vmax.f32 %v933_v55, %v934_v62  ;;  %v1254_v36 = vmax.bf16 %v4649_v31, %v4648_v30  ;;  %v4660_v62 = vld [vmem:[%s5132_s16 + $0x120] sm:$0xff]   ;;  %v4680_v30 = vld [vmem:[%s5132_s16 + $0x250] sm:$0xff]  }
  0x35   : > { %v945_v2 = vmax.f32 %v943_v51, %v944_v58  ;;  %v2713_v6 = vunpack.c.l.b16 %v902_v60  ;;  %v2714_v9 = vunpack.c.l.b16 %v914_v0  ;;  %v1240_v38 = vmax.bf16 %v4644_v32, %v1239_v34  ;;  %v4655_v51 = vld [vmem:[%s5132_s16 + $0xc8] sm:$0xff]   ;;  %v4657_v60 = vld [vmem:[%s5132_s16 + $0xd8] sm:$0xff]   ;;  %v4684_v31 = vld [vmem:[%s5132_s16 + $0x2a0] sm:$0xff]  }
  0x36   : > { %v2710_v59 = vunpack.c.l.b16 %v866_v48  ;;  %v926_v4 = vpack.i.bf16 %v925_v61, %v925_v61  ;;  %v936_v11 = vrot.slane %v935_v5, 1  ;;  %v1255_v40 = vmax.bf16 %v4650_v33, %v1254_v36  ;;  %v4661_v0 = vld [vmem:[%s5132_s16 + $0x128] sm:$0xff]   ;;  %v4686_v36 = vld [vmem:[%s5132_s16 + $0x2b0] sm:$0xff]  }
  0x37   : > { %v946_v8 = vrot.slane %v945_v2, 2  ;;  %v1241_v42 = vmax.bf16 %v4645_v35, %v1240_v38  ;;  %v1269_v58 = vmax.bf16 %v4655_v51, %v4654_v50  ;;  %v4671_v34 = vld [vmem:[%s5132_s16 + $0x1a8] sm:$0xff]   ;;  %v4691_v51 = vld [vmem:[%s5132_s16 + $0x38] sm:$0xff]  }
  0x38   : > { %v2719_v7 = vsel %vm2718_vm1, %v2711_v63, %v2710_v59  ;;  %v2715_v14 = vunpack.c.l.b16 %v926_v4  ;;  %v937_v15 = vmax.f32 %v935_v5, %v936_v11  ;;  %v1256_v44 = vmax.bf16 %v4651_v37, %v1255_v40  ;;  %v4656_v59 = vld [vmem:[%s5132_s16 + $0xd0] sm:$0xff]   ;;  %v4658_v63 = vld [vmem:[%s5132_s16 + $0xe0] sm:$0xff]   ;;  %v4685_v35 = vld [vmem:[%s5132_s16 + $0x2a8] sm:$0xff]  }
  0x39   : > { %v2721_v10 = vsel %vm2720_vm2, %v2712_v3, %v2719_v7  ;;  %v947_v13 = vmax.f32 %v945_v2, %v946_v8  ;;  %v1242_v46 = vmax.bf16 %v4646_v39, %v1241_v42  ;;  %v4662_v2 = vld [vmem:[%s5132_s16 + $0x130] sm:$0xff]   ;;  %v1270_v4 = vmax.bf16 %v4656_v59, %v1269_v58  ;;  %v4666_v5 = vld [vmem:[%s5132_s16 + $0x180] sm:$0xff]   ;;  %v4663_v7 = vld [vmem:[%s5132_s16 + $0x138] sm:$0xff]  }
  0x3a   : > { %v2723_v12 = vsel %vm2722_vm3, %v2713_v6, %v2721_v10  ;;  %v938_v18 = vpack.i.bf16 %v937_v15, %v937_v15  ;;  %v1257_v47 = vmax.bf16 %v4652_v41, %v1256_v44  ;;  %v4659_v6 = vld [vmem:[%s5132_s16 + $0xe8] sm:$0xff]   ;;  %v1284_v11 = vmax.bf16 %v4661_v0, %v4660_v62  ;;  %v4676_v40 = vld [vmem:[%s5132_s16 + $0x200] sm:$0xff]   ;;  %v4681_v41 = vld [vmem:[%s5132_s16 + $0x258] sm:$0xff]  }
  0x3b   : > { %v2725_v16 = vsel %vm2724_vm4, %v2714_v9, %v2723_v12  ;;  %v948_v17 = vrot.slane %v947_v13, 1  ;;  %v1243_v48 = vmax.bf16 %v4647_v43, %v1242_v46  ;;  %v4667_v8 = vld [vmem:[%s5132_s16 + $0x188] sm:$0xff]   ;;  %v1271_v10 = vmax.bf16 %v4657_v60, %v1270_v4  ;;  %v4668_v12 = vld [vmem:[%s5132_s16 + $0x190] sm:$0xff]   ;;  %v4682_v58 = vld [vmem:[%s5132_s16 + $0x260] sm:$0xff]  }
  0x3c   : > { %v2727_v20 = vsel %vm2726_vm5, %v2715_v14, %v2725_v16  ;;  %v2716_v21 = vunpack.c.l.b16 %v938_v18  ;;  %v1258_v49 = vmax.bf16 %v4653_v45, %v1257_v47  ;;  %v4664_v14 = vld [vmem:[%s5132_s16 + $0x140] sm:$0xff]   ;;  %v4673_v15 = vld [vmem:[%s5132_s16 + $0x1e8] sm:$0xff]   ;;  %v1285_v18 = vmax.bf16 %v4662_v2, %v1284_v11  ;;  %v4690_v46 = vld [vmem:[%s5132_s16 + $0x30] sm:$0xff]  }
  0x3d   : > { %v949_v19 = vmax.f32 %v947_v13, %v948_v17  ;;  %v1244_v52 = vunpack.i.l.bf16 %v1243_v48  ;;  %v1245_v53 = vunpack.i.h.bf16 %v1243_v48  ;;  %v4672_v13 = vld [vmem:[%s5132_s16 + $0x1e0] sm:$0xff]   ;;  %v1272_v17 = vmax.bf16 %v4658_v63, %v1271_v10  ;;  %v4687_v47 = vld [vmem:[%s5132_s16 + $0x2b8] sm:$0xff]   ;;  %v4693_v63 = vld [vmem:[%s5132_s16 + $0x48] sm:$0xff]  }
  0x3e   : > { %v2729_v23 = vsel %vm2728_vm6, %v2716_v21, %v2727_v20  ;;  %v1259_v54 = vunpack.i.l.bf16 %v1258_v49  ;;  %v1260_v55 = vunpack.i.h.bf16 %v1258_v49  ;;  %v4674_v20 = vld [vmem:[%s5132_s16 + $0x1f0] sm:$0xff]   ;;  %v4678_v21 = vld [vmem:[%s5132_s16 + $0x240] sm:$0xff]   ;;  %v1286_v28 = vmax.bf16 %v4663_v7, %v1285_v18  ;;  %v4689_v7 = vld [vmem:[%s5132_s16 + $0x2c8] sm:$0xff]  }
  0x3f   : > { %v950_v22 = vpack.i.bf16 %v949_v19, %v949_v19  ;;  %v1246_v56 = vmax.f32 %v1244_v52, %v1245_v53  ;;  %v4669_v19 = vld [vmem:[%s5132_s16 + $0x198] sm:$0xff]   ;;  %v1314_v33 = vmax.bf16 %v4673_v15, %v4672_v13  ;;  %v1344_v50 = vmax.bf16 %v4685_v35, %v4684_v31  ;;  %v4692_v52 = vld [vmem:[%s5132_s16 + $0x40] sm:$0xff]   ;;  %v4677_v53 = vld [vmem:[%s5132_s16 + $0x208] sm:$0xff]  }
  0x40   : > { %v1261_v57 = vmax.f32 %v1259_v54, %v1260_v55  ;;  %v1287_v42 = vmax.bf16 %v4664_v14, %v1286_v28  ;;  %v4688_v59 = vld [vmem:[%s5132_s16 + $0x2c0] sm:$0xff]   ;;  %v1647_v0 = vmax.bf16 %v4691_v51, %v4690_v46  ;;  %v4694_v11 = vld [vmem:[%s5132_s16 + $0x50] sm:$0xff]   ;;  %v4697_v18 = vld [vmem:[%s5132_s16 + $0x98] sm:$0xff]  }
  0x41   : > { %v2717_v24 = vunpack.c.l.b16 %v950_v22  ;;  %v1247_v61 = vrot.slane %v1246_v56, 4  ;;  %v1299_v22 = vmax.bf16 %v4667_v8, %v4666_v5  ;;  %v1315_v44 = vmax.bf16 %v4674_v20, %v1314_v33  ;;  %v4698_v31 = vld [vmem:[%s5132_s16 + $0xa0] sm:$0xff]  }
  0x42   : > { %v1262_v3 = vrot.slane %v1261_v57, 4  ;;  %v1345_v62 = vmax.bf16 %v4686_v36, %v1344_v50  ;;  %v4703_v50 = vld [vmem:[%s5132_s16 + $0xf8] sm:$0xff]  }
  0x43   : > { %v2731_v26 = vsel %vm2730_vm7, %v2717_v24, %v2729_v23  ;;  %v1248_v9 = vmax.f32 %v1246_v56, %v1247_v61  ;;  %v4665_v23 = vld [vmem:[%s5132_s16 + $0x148] sm:$0xff]   ;;  %v4670_v24 = vld [vmem:[%s5132_s16 + $0x1a0] sm:$0xff]   ;;  %v1300_v32 = vmax.bf16 %v4668_v12, %v1299_v22  ;;  %v1316_v56 = vmax.bf16 %v4675_v29, %v1315_v44 }
  0x44   : > { %v2732_v27 = vpack.c.b16 %v2731_v26, %v2731_v26  ;;  %v1263_v16 = vmax.f32 %v1261_v57, %v1262_v3  ;;  %v1288_v54 = vmax.bf16 %v4665_v23, %v1287_v42  ;;  %v1346_v10 = vmax.bf16 %v4687_v47, %v1345_v62  ;;  %v4699_v47 = vld [vmem:[%s5132_s16 + $0xa8] sm:$0xff]  }
  0x45   : > { %v1249_v26 = vrot.slane %v1248_v9, 2  ;;  %v1301_v43 = vmax.bf16 %v4669_v19, %v1300_v32  ;;  %v1317_v5 = vmax.bf16 %v4676_v40, %v1316_v56  ;;  %v1648_v12 = vmax.bf16 %v4692_v52, %v1647_v0 }
  0x46   : > { %4415 = vmatmul.mubr.bf16.vlgmr.msra.gmra.mrb[0].mxu0 %v2732_v27  ;;  %v1273_v27 = vmax.bf16 %v4659_v6, %v1272_v17  ;;  %v1264_v37 = vrot.slane %v1263_v16, 2  ;;  %v1289_v2 = vunpack.i.l.bf16 %v1288_v54  ;;  %v1290_v3 = vunpack.i.h.bf16 %v1288_v54  ;;  %v4683_v6 = vld [vmem:[%s5132_s16 + $0x268] sm:$0xff]   ;;  %v4696_v17 = vld [vmem:[%s5132_s16 + $0x90] sm:$0xff]  }
  0x47   : > { %4439 = vmatpush3.bf16.msra.mxu0 %v4641_v25  ;;  %4454 = vmatprep.mubr.msk.bf16.mxu0 %vm4946_vm0, %v4945_v1  ;;  %v4679_v25 = vld [vmem:[%s5132_s16 + $0x248] sm:$0xff]   ;;  %v5194_v48 = vmax.f32 %v1248_v9, %v1249_v26  ;;  %v1302_v55 = vmax.bf16 %v4670_v24, %v1301_v43  ;;  %v1649_v22 = vmax.bf16 %v4693_v63, %v1648_v12 }
  0x48   : > { %4440 = vmatprep.subr.bf16.mxu0 %v4945_v1  ;;  %v1274_v38 = vunpack.i.l.bf16 %v1273_v27  ;;  %v1275_v39 = vunpack.i.h.bf16 %v1273_v27  ;;  %v1329_v45 = vmax.bf16 %v4679_v25, %v4678_v21  ;;  %v5201_v60 = vmax.f32 %v1263_v16, %v1264_v37 }
  0x49   : > { %v1303_v4 = vmax.bf16 %v4671_v34, %v1302_v55  ;;  %v1291_v13 = vmax.f32 %v1289_v2, %v1290_v3  ;;  %v1318_v16 = vmax.bf16 %v4677_v53, %v1317_v5  ;;  %v1347_v21 = vmax.bf16 %v4688_v59, %v1346_v10  ;;  %v4701_v59 = vld [vmem:[%s5132_s16 + $0xb8] sm:$0xff]   ;;  %v4708_v5 = vld [vmem:[%s5132_s16 + $0x150] sm:$0xff]  }
  0x4a   : > { %v1276_v49 = vmax.f32 %v1274_v38, %v1275_v39  ;;  %v1330_v57 = vmax.bf16 %v4680_v30, %v1329_v45  ;;  %v4695_v30 = vld [vmem:[%s5132_s16 + $0x58] sm:$0xff]   ;;  %v1650_v32 = vmax.bf16 %v4694_v11, %v1649_v22  ;;  %v1662_v36 = vmax.bf16 %v4697_v18, %v4696_v17  ;;  %v4714_v17 = vld [vmem:[%s5132_s16 + $0x1b0] sm:$0xff]  }
  0x4b   : > { %v1304_v14 = vunpack.i.l.bf16 %v1303_v4  ;;  %v1305_v15 = vunpack.i.h.bf16 %v1303_v4  ;;  %v1292_v23 = vrot.slane %v1291_v13, 4  ;;  %v1319_v25 = vunpack.i.l.bf16 %v1318_v16  ;;  %v4705_v4 = vld [vmem:[%s5132_s16 + $0x108] sm:$0xff]   ;;  %v4715_v18 = vld [vmem:[%s5132_s16 + $0x1b8] sm:$0xff]  }
  0x4c   : > { %v1277_v61 = vrot.slane %v1276_v49, 4  ;;  %v1331_v9 = vmax.bf16 %v4681_v41, %v1330_v57  ;;  %v1320_v26 = vunpack.i.h.bf16 %v1318_v16  ;;  %v1348_v29 = vmax.bf16 %v4689_v7, %v1347_v21 }
  0x4d   : > { %v1306_v24 = vmax.f32 %v1304_v14, %v1305_v15  ;;  %v1293_v33 = vmax.f32 %v1291_v13, %v1292_v23  ;;  %v1251_v37 = vrot.slane %v5194_v48, 1  ;;  %v1266_v45 = vrot.slane %v5201_v60, 1  ;;  %v4706_v14 = vld [vmem:[%s5132_s16 + $0x110] sm:$0xff]   ;;  %v4710_v15 = vld [vmem:[%s5132_s16 + $0x160] sm:$0xff]  }
  0x4e   : > { %v1278_v8 = vmax.f32 %v1276_v49, %v1277_v61  ;;  %v1332_v20 = vmax.bf16 %v4682_v58, %v1331_v9  ;;  %v1321_v35 = vmax.f32 %v1319_v25, %v1320_v26  ;;  %v1349_v40 = vunpack.i.l.bf16 %v1348_v29  ;;  %v4702_v49 = vld [vmem:[%s5132_s16 + $0xf0] sm:$0xff]   ;;  %v4704_v61 = vld [vmem:[%s5132_s16 + $0x100] sm:$0xff]   ;;  %v4711_v25 = vld [vmem:[%s5132_s16 + $0x168] sm:$0xff]  }
  0x4f   : > { %v1307_v34 = vrot.slane %v1306_v24, 4  ;;  %v1294_v41 = vrot.slane %v1293_v33, 2  ;;  %v1350_v44 = vunpack.i.h.bf16 %v1348_v29  ;;  %v1651_v51 = vmax.bf16 %v4695_v30, %v1650_v32  ;;  %v4700_v58 = vld [vmem:[%s5132_s16 + $0xb0] sm:$0xff]  }
  0x50   : > { %v1279_v19 = vrot.slane %v1278_v8, 2  ;;  %v1333_v28 = vmax.bf16 %v4683_v6, %v1332_v20  ;;  %v1322_v43 = vrot.slane %v1321_v35, 4  ;;  %v1663_v52 = vmax.bf16 %v4698_v31, %v1662_v36  ;;  %v4709_v6 = vld [vmem:[%s5132_s16 + $0x158] sm:$0xff]   ;;  %v4741_v26 = vld [vmem:[%s5882_s3 + $0x90] sm:$0xff]  }
  0x51   : > { %v1308_v42 = vmax.f32 %v1306_v24, %v1307_v34  ;;  %v1295_v54 = vmax.f32 %v1293_v33, %v1294_v41  ;;  %v1351_v57 = vmax.f32 %v1349_v40, %v1350_v44  ;;  %v1652_v62 = vunpack.i.l.bf16 %v1651_v51  ;;  %v4707_v24 = vld [vmem:[%s5132_s16 + $0x118] sm:$0xff]   ;;  %v4720_v29 = vld [vmem:[%s5132_s16 + $0x210] sm:$0xff]   ;;  %v4717_v40 = vld [vmem:[%s5132_s16 + $0x1c8] sm:$0xff]  }
  0x52   : > { %v1280_v27 = vmax.f32 %v1278_v8, %v1279_v19  ;;  %v1334_v38 = vunpack.i.l.bf16 %v1333_v28  ;;  %v1335_v39 = vunpack.i.h.bf16 %v1333_v28  ;;  %v1323_v56 = vmax.f32 %v1321_v35, %v1322_v43  ;;  %v4716_v28 = vld [vmem:[%s5132_s16 + $0x1c0] sm:$0xff]   ;;  %v4712_v36 = vld [vmem:[%s5132_s16 + $0x170] sm:$0xff]  }
  0x53   : > { %v1309_v55 = vrot.slane %v1308_v42, 2  ;;  %v1653_v63 = vunpack.i.h.bf16 %v1651_v51  ;;  %v1252_v0 = vmax.f32 %v5194_v48, %v1251_v37  ;;  %v1296_v2 = vrot.slane %v1295_v54, 1  ;;  %v4739_v48 = vld [vmem:[%s5882_s3 + $0x88] sm:$0xff]   ;;  %v4721_v37 = vld [vmem:[%s5132_s16 + $0x218] sm:$0xff]   ;;  %v4722_v41 = vld [vmem:[%s5132_s16 + $0x220] sm:$0xff]  }
  0x54   : > { %v1336_v46 = vmax.f32 %v1334_v38, %v1335_v39  ;;  %v1281_v53 = vrot.slane %v1280_v27, 1  ;;  %v1664_v9 = vmax.bf16 %v4699_v47, %v1663_v52  ;;  %v1677_v10 = vmax.bf16 %v4703_v50, %v4702_v49  ;;  %4441 = vmatpush3.bf16.msra.mxu0 %v4739_v48  ;;  %v4713_v47 = vld [vmem:[%s5132_s16 + $0x178] sm:$0xff]   ;;  %v4726_v49 = vld [vmem:[%s5132_s16 + $0x270] sm:$0xff]  }
  0x55   : > { %v1310_v7 = vmax.f32 %v1308_v42, %v1309_v55  ;;  %v1654_v8 = vmax.f32 %v1652_v62, %v1653_v63  ;;  %v1267_v11 = vmax.f32 %v5201_v60, %v1266_v45  ;;  %v1324_v13 = vrot.slane %v1323_v56, 2  ;;  %4442 = vmatprep.subr.bf16.mxu0 %v4945_v1  ;;  %v4727_v50 = vld [vmem:[%s5132_s16 + $0x278] sm:$0xff]   ;;  %v4718_v55 = vld [vmem:[%s5132_s16 + $0x1d0] sm:$0xff]   ;;  %v4728_v63 = vld [vmem:[%s5132_s16 + $0x280] sm:$0xff]  }
  0x56   : > { %v1337_v3 = vrot.slane %v1336_v46, 4  ;;  %v1282_v12 = vmax.f32 %v1280_v27, %v1281_v53  ;;  %v1352_v16 = vrot.slane %v1351_v57, 4  ;;  %v1665_v20 = vmax.bf16 %v4700_v58, %v1664_v9  ;;  %v4743_v53 = vld [vmem:[%s5882_s3 + $0x98] sm:$0xff]  }
  0x57   : > { %v1655_v19 = vrot.slane %v1654_v8, 4  ;;  %v1678_v21 = vmax.bf16 %v4704_v61, %v1677_v10  ;;  %v5231_v22 = vpack.i.bf16 %v1252_v0, %v1252_v0  ;;  %v1297_v60 = vmax.f32 %v1295_v54, %v1296_v2  ;;  %v4733_v0 = vld [vmem:[%s5132_s16 + $0x2d8] sm:$0xff]  }
  0x58   : > { %v1338_v23 = vmax.f32 %v1336_v46, %v1337_v3  ;;  %v1311_v27 = vrot.slane %v1310_v7, 1  ;;  %v1666_v31 = vmax.bf16 %v4701_v59, %v1665_v20  ;;  %v5241_v33 = vpack.i.bf16 %v1267_v11, %v1267_v11  ;;  %4443 = vmatpush3.bf16.msra.mxu0 %v4741_v26  ;;  %v4745_v11 = vld [vmem:[%s5882_s3 + $0xa0] sm:$0xff]  }
  0x59   : > { %v1656_v30 = vmax.f32 %v1654_v8, %v1655_v19  ;;  %v1679_v32 = vmax.bf16 %v4705_v4, %v1678_v21  ;;  %v5243_v34 = vpack.i.bf16 %v1282_v12, %v1282_v12  ;;  %v5245_v35 = vmax.f32 %v1323_v56, %v1324_v13  ;;  %v4723_v56 = vld [vmem:[%s5132_s16 + $0x228] sm:$0xff]   ;;  %4444 = vmatprep.subr.bf16.mxu0 %v4945_v1 }
  0x5a   : > { %v1692_v38 = vmax.bf16 %v4709_v6, %v4708_v5  ;;  %v5249_v39 = vmax.f32 %v1351_v57, %v1352_v16  ;;  %v1667_v43 = vunpack.i.l.bf16 %v1666_v31  ;;  %v1668_v44 = vunpack.i.h.bf16 %v1666_v31  ;;  %v4732_v57 = vld [vmem:[%s5132_s16 + $0x2d0] sm:$0xff]   ;;  %v4719_v6 = vld [vmem:[%s5132_s16 + $0x1d8] sm:$0xff]   ;;  %v4729_v13 = vld [vmem:[%s5132_s16 + $0x288] sm:$0xff]  }
  0x5b   : > { %v1657_v42 = vrot.slane %v1656_v30, 2  ;;  %v5253_v45 = vpack.i.bf16 %v1297_v60, %v1297_v60  ;;  %v1339_v46 = vrot.slane %v1338_v23, 2  ;;  %v1680_v51 = vmax.bf16 %v4706_v14, %v1679_v32  ;;  %v4725_v16 = vld [vmem:[%s5132_s16 + $0x238] sm:$0xff]   ;;  %v4730_v60 = vld [vmem:[%s5132_s16 + $0x290] sm:$0xff]  }
  0x5c   : > { %v1693_v52 = vmax.bf16 %v4710_v15, %v1692_v38  ;;  %v5261_v54 = vmax.f32 %v1310_v7, %v1311_v27  ;;  %v1669_v59 = vmax.f32 %v1667_v43, %v1668_v44  ;;  %v1707_v61 = vmax.bf16 %v4715_v18, %v4714_v17  ;;  %v4724_v7 = vld [vmem:[%s5132_s16 + $0x230] sm:$0xff]   ;;  %4445 = vmatpush3.bf16.msra.mxu0 %v4743_v53  ;;  %v4734_v17 = vld [vmem:[%s5132_s16 + $0x2e0] sm:$0xff]   ;;  %v4735_v27 = vld [vmem:[%s5132_s16 + $0x2e8] sm:$0xff]  }
  0x5d   : > { %v1658_v58 = vmax.f32 %v1656_v30, %v1657_v42  ;;  %v1326_v62 = vrot.slane %v5245_v35, 1  ;;  %v1681_v2 = vmax.bf16 %v4707_v24, %v1680_v51  ;;  %v1722_v4 = vmax.bf16 %v4721_v37, %v4720_v29  ;;  %4446 = vmatprep.subr.bf16.mxu0 %v4945_v1  ;;  %v4731_v32 = vld [vmem:[%s5132_s16 + $0x298] sm:$0xff]   ;;  %v4747_v42 = vld [vmem:[%s5882_s3 + $0xa8] sm:$0xff]  }
  0x5e   : > { %v1694_v3 = vmax.bf16 %v4711_v25, %v1693_v52  ;;  %v1354_v5 = vrot.slane %v5249_v39, 2  ;;  %v1670_v9 = vrot.slane %v1669_v59, 4  ;;  %v1708_v10 = vmax.bf16 %v4716_v28, %v1707_v61  ;;  %v4737_v53 = vld [vmem:[%s5132_s16 + $0x2f8] sm:$0xff]  }
  0x5f   : > { %v1659_v8 = vrot.slane %v1658_v58, 1  ;;  %v5276_v12 = vmax.f32 %v1338_v23, %v1339_v46  ;;  %v1682_v14 = vunpack.i.l.bf16 %v1681_v2  ;;  %v1683_v15 = vunpack.i.h.bf16 %v1681_v2 }
  0x60   : > { %v1695_v48 = vmax.bf16 %v4712_v36, %v1694_v3  ;;  %v1671_v19 = vmax.f32 %v1669_v59, %v1670_v9  ;;  %v1709_v20 = vmax.bf16 %v4717_v40, %v1708_v10  ;;  %v1723_v21 = vmax.bf16 %v4722_v41, %v1722_v4  ;;  %v4736_v36 = vld [vmem:[%s5132_s16 + $0x2f0] sm:$0xff]   ;;  %4447 = vmatpush3.bf16.msra.mxu0 %v4745_v11 }
  0x61   : > { %v1660_v18 = vmax.f32 %v1658_v58, %v1659_v8  ;;  %v1684_v23 = vmax.f32 %v1682_v14, %v1683_v15  ;;  %v1737_v25 = vmax.bf16 %v4727_v50, %v4726_v49  ;;  %v1752_v26 = vmax.bf16 %v4733_v0, %v4732_v57  ;;  %4448 = vmatprep.subr.bf16.mxu0 %v4945_v1  ;;  %v4749_v59 = vld [vmem:[%s5882_s3 + $0xb0] sm:$0xff]  }
  0x62   : > { %v1696_v24 = vmax.bf16 %v4713_v47, %v1695_v48  ;;  %v1672_v29 = vrot.slane %v1671_v19, 2  ;;  %v1710_v30 = vmax.bf16 %v4718_v55, %v1709_v20  ;;  %v1724_v31 = vmax.bf16 %v4723_v56, %v1723_v21 }
  0x63   : > { %v5291_v28 = vpack.i.bf16 %v1660_v18, %v1660_v18  ;;  %v1685_v37 = vrot.slane %v1684_v23, 4  ;;  %v1738_v41 = vmax.bf16 %v4728_v63, %v1737_v25  ;;  %v1753_v47 = vmax.bf16 %v4734_v17, %v1752_v26 }
  0x64   : > { %v1697_v38 = vunpack.i.l.bf16 %v1696_v24  ;;  %v1698_v40 = vunpack.i.h.bf16 %v1696_v24  ;;  %v1673_v43 = vmax.f32 %v1671_v19, %v1672_v29  ;;  %v1711_v44 = vmax.bf16 %v4719_v6, %v1710_v30  ;;  %4449 = vmatpush3.bf16.msra.mxu0 %v4747_v42 }
  0x65   : > { %v1725_v46 = vmax.bf16 %v4724_v7, %v1724_v31  ;;  %v1686_v49 = vmax.f32 %v1684_v23, %v1685_v37  ;;  %v1739_v51 = vmax.bf16 %v4729_v13, %v1738_v41  ;;  %v2655_v52 = vmax.bf16 %v5291_v28, %v5231_v22  ;;  %4450 = vmatprep.subr.bf16.mxu0 %v4945_v1 }
  0x66   : > { %v1699_v50 = vmax.f32 %v1697_v38, %v1698_v40  ;;  %v1674_v55 = vrot.slane %v1673_v43, 1  ;;  %v1712_v56 = vunpack.i.l.bf16 %v1711_v44  ;;  %v1713_v57 = vunpack.i.h.bf16 %v1711_v44 }
  0x67   : > { %v1726_v58 = vmax.bf16 %v4725_v16, %v1725_v46  ;;  %v1687_v61 = vrot.slane %v1686_v49, 2  ;;  %v1740_v0 = vmax.bf16 %v4730_v60, %v1739_v51  ;;  %v1754_v2 = vmax.bf16 %v4735_v27, %v1753_v47  ;;  %v4751_v16 = vld [vmem:[%s5882_s3 + $0xb8] sm:$0xff]  }
  0x68   : > { %v1700_v63 = vrot.slane %v1699_v50, 4  ;;  %v1675_v3 = vmax.f32 %v1673_v43, %v1674_v55  ;;  %v1714_v4 = vmax.f32 %v1712_v56, %v1713_v57  ;;  %v1355_v13 = vmax.f32 %v5249_v39, %v1354_v5  ;;  %4451 = vmatpush3.bf16.msra.mxu0 %v4749_v59 }
  0x69   : > { %v1727_v6 = vunpack.i.l.bf16 %v1726_v58  ;;  %v1728_v7 = vunpack.i.h.bf16 %v1726_v58  ;;  %v1688_v8 = vmax.f32 %v1686_v49, %v1687_v61  ;;  %v1741_v10 = vmax.bf16 %v4731_v32, %v1740_v0  ;;  %4452 = vmatprep.subr.bf16.mxu0 %v4945_v1 }
  0x6a   : > { %v1701_v9 = vmax.f32 %v1699_v50, %v1700_v63  ;;  %v1755_v11 = vmax.bf16 %v4736_v36, %v1754_v2  ;;  %v5309_v14 = vpack.i.bf16 %v1675_v3, %v1675_v3  ;;  %v1715_v15 = vrot.slane %v1714_v4, 4 }
  0x6b   : > { %v1729_v48 = vmax.f32 %v1727_v6, %v1728_v7  ;;  %v1689_v17 = vrot.slane %v1688_v8, 1  ;;  %v1742_v19 = vunpack.i.l.bf16 %v1741_v10  ;;  %v1743_v20 = vunpack.i.h.bf16 %v1741_v10 }
  0x6c   : > { %v1702_v18 = vrot.slane %v1701_v9, 2  ;;  %v1716_v21 = vmax.f32 %v1714_v4, %v1715_v15  ;;  %v1756_v23 = vmax.bf16 %v4737_v53, %v1755_v11  ;;  %v2656_v24 = vmax.bf16 %v5309_v14, %v5241_v33  ;;  %4453 = vmatpush3.bf16.msra.mxu0 %v4751_v16 }
  0x6d   : > { %v1730_v60 = vrot.slane %v1729_v48, 4  ;;  %v1690_v39 = vmax.f32 %v1688_v8, %v1689_v17  ;;  %v1744_v25 = vmax.f32 %v1742_v19, %v1743_v20  ;;  %v2857_v26 = vunpack.c.l.b16 %v2655_v52  ;;  %4478 = vmatprep.subr.bf16.mxu0 %v4945_v1 }
  0x6e   : > { %v1703_v5 = vmax.f32 %v1701_v9, %v1702_v18  ;;  %v1717_v27 = vrot.slane %v1716_v21, 2  ;;  %v1757_v30 = vunpack.i.l.bf16 %v1756_v23  ;;  %v1758_v31 = vunpack.i.h.bf16 %v1756_v23 }
  0x6f   : > { %v1731_v29 = vmax.f32 %v1729_v48, %v1730_v60  ;;  %v5317_v32 = vpack.i.bf16 %v1690_v39, %v1690_v39  ;;  %v1745_v37 = vrot.slane %v1744_v25, 4  ;;  %v2858_v38 = vunpack.c.l.b16 %v2656_v24 }
  0x70   : > { %v1704_v36 = vrot.slane %v1703_v5, 1  ;;  %v1341_v40 = vrot.slane %v5276_v12, 1  ;;  %v1718_v41 = vmax.f32 %v1716_v21, %v1717_v27  ;;  %v1759_v43 = vmax.f32 %v1757_v30, %v1758_v31  ;;  %v4738_v31 = vld [vmem:[%s5882_s3 + $0xc0] sm:$0xff]  }
  0x71   : > { %v1732_v42 = vrot.slane %v1731_v29, 2  ;;  %v1327_v44 = vmax.f32 %v5245_v35, %v1326_v62  ;;  %v1746_v47 = vmax.f32 %v1744_v25, %v1745_v37  ;;  %v2657_v49 = vmax.bf16 %v5317_v32, %v5243_v34 }
  0x72   : > { %v1705_v46 = vmax.f32 %v1703_v5, %v1704_v36  ;;  %v5328_v50 = vpack.i.bf16 %v5261_v54, %v5261_v54  ;;  %v1719_v51 = vrot.slane %v1718_v41, 1  ;;  %v1760_v53 = vrot.slane %v1759_v43, 4 }
  0x73   : > { %v1733_v52 = vmax.f32 %v1731_v29, %v1732_v42  ;;  %v1747_v56 = vrot.slane %v1746_v47, 2  ;;  %v2859_v57 = vunpack.c.l.b16 %v2657_v49  ;;  %v2865_v58 = vsel %vm2718_vm1, %v2858_v38, %v2857_v26  ;;  %v4740_v38 = vld [vmem:[%s5882_s3 + $0xc8] sm:$0xff]  }
  0x74   : > { %v5330_v55 = vpack.i.bf16 %v1705_v46, %v1705_v46  ;;  %v1356_v59 = vrot.slane %v1355_v13, 1  ;;  %v1720_v35 = vmax.f32 %v1718_v41, %v1719_v51  ;;  %v1761_v61 = vmax.f32 %v1759_v43, %v1760_v53  ;;  %v4753_v43 = vld [vmem:[%s5288_s15] sm:$0xff]   ;;  %v4744_v51 = vld [vmem:[%s5882_s3 + $0xd8] sm:$0xff]   ;;  %v4759_v53 = vld [vmem:[%s5288_s15 + $0x70] sm:$0xff]  }
  0x75   : > { %v1734_v62 = vrot.slane %v1733_v52, 1  ;;  %v5333_v63 = vpack.i.bf16 %v1327_v44, %v1327_v44  ;;  %v1342_v0 = vmax.f32 %v5276_v12, %v1341_v40  ;;  %v1748_v2 = vmax.f32 %v1746_v47, %v1747_v56  ;;  %v4742_v40 = vld [vmem:[%s5882_s3 + $0xd0] sm:$0xff]   ;;  %v4754_v44 = vld [vmem:[%s5288_s15 + $0x8] sm:$0xff]   ;;  %v4757_v46 = vld [vmem:[%s5288_s15 + $0x60] sm:$0xff]  }
  0x76   : > { %v2658_v54 = vmax.bf16 %v5330_v55, %v5253_v45  ;;  %v5338_v3 = vpack.i.bf16 %v1720_v35, %v1720_v35  ;;  %v1762_v6 = vrot.slane %v1761_v61, 2  ;;  %v2866_v7 = vsel %vm2720_vm2, %v2859_v57, %v2865_v58  ;;  %v4758_v47 = vld [vmem:[%s5288_s15 + $0x68] sm:$0xff]  }
  0x77   : > { %v1735_v4 = vmax.f32 %v1733_v52, %v1734_v62  ;;  %v1749_v8 = vrot.slane %v1748_v2, 1  ;;  %v1357_v10 = vmax.f32 %v1355_v13, %v1356_v59  ;;  %v5345_v12 = vpack.i.bf16 %v1342_v0, %v1342_v0  ;;  %v4760_v62 = vld [vmem:[%s5288_s15 + $0x78] sm:$0xff]  }
  0x78   : > { %v2860_v9 = vunpack.c.l.b16 %v2658_v54  ;;  %v1763_v15 = vmax.f32 %v1761_v61, %v1762_v6  ;;  %v2659_v48 = vmax.bf16 %v5338_v3, %v5328_v50  ;;  %v3137_v41 = vunpack.c.l.b16 %v5231_v22  ;;  %v4748_v61 = vld [vmem:[%s5882_s3 + $0xe8] sm:$0xff]   ;;  %v4750_v6 = vld [vmem:[%s5882_s3 + $0xf0] sm:$0xff]  }
  0x79   : > { %v5341_v11 = vpack.i.bf16 %v1735_v4, %v1735_v4  ;;  %v1750_v16 = vmax.f32 %v1748_v2, %v1749_v8  ;;  %v5352_v60 = vpack.i.bf16 %v1357_v10, %v1357_v10  ;;  %v3138_v42 = vunpack.c.l.b16 %v5241_v33  ;;  %v4755_v33 = vld [vmem:[%s5288_s15 + $0x10] sm:$0xff]  }
  0x7a   : > { %v2867_v17 = vsel %vm2722_vm3, %v2860_v9, %v2866_v7  ;;  %v1764_v18 = vrot.slane %v1763_v15, 1  ;;  %v2861_v20 = vunpack.c.l.b16 %v2659_v48  ;;  %v3139_v49 = vunpack.c.l.b16 %v5243_v34  ;;  %v4746_v34 = vld [vmem:[%s5882_s3 + $0xe0] sm:$0xff]  }
  0x7b   : > { %v2660_v19 = vmax.bf16 %v5341_v11, %v5333_v63  ;;  %v5350_v21 = vpack.i.bf16 %v1750_v16, %v1750_v16  ;;  %v3145_v52 = vsel %vm2718_vm1, %v3138_v42, %v3137_v41  ;;  %v3140_v22 = vunpack.c.l.b16 %v5253_v45  ;;  %v4756_v45 = vld [vmem:[%s5288_s15 + $0x18] sm:$0xff]  }
  0x7c   : > { %v1765_v13 = vmax.f32 %v1763_v15, %v1764_v18  ;;  %v2868_v24 = vsel %vm2724_vm4, %v2861_v20, %v2867_v17  ;;  %v3146_v56 = vsel %vm2720_vm2, %v3139_v49, %v3145_v52  ;;  %v1959_v57 = vmax.bf16 %v4754_v44, %v4753_v43  ;;  %v4752_v15 = vld [vmem:[%s5882_s3 + $0xf8] sm:$0xff]   ;;  %v4761_v17 = vld [vmem:[%s5288_s15 + $0xc0] sm:$0xff]   ;;  %v4762_v18 = vld [vmem:[%s5288_s15 + $0xc8] sm:$0xff]  }
  0x7d   : > { %v2862_v23 = vunpack.c.l.b16 %v2660_v19  ;;  %v2661_v39 = vmax.bf16 %v5350_v21, %v5345_v12  ;;  %v1972_v58 = vmax.bf16 %v4758_v47, %v4757_v46  ;;  %v3141_v59 = vunpack.c.l.b16 %v5328_v50  ;;  %v4767_v43 = vld [vmem:[%s5288_s15 + $0x130] sm:$0xff]   ;;  %v4768_v44 = vld [vmem:[%s5288_s15 + $0x138] sm:$0xff]   ;;  %v4769_v46 = vld [vmem:[%s5288_s15 + $0x180] sm:$0xff]  }
  0x7e   : > { %v5357_v5 = vpack.i.bf16 %v1765_v13, %v1765_v13  ;;  %v3147_v35 = vsel %vm2722_vm3, %v3140_v22, %v3146_v56  ;;  %v3142_v0 = vunpack.c.l.b16 %v5333_v63  ;;  %v1960_v2 = vmax.bf16 %v4755_v33, %v1959_v57  ;;  %v4770_v47 = vld [vmem:[%s5288_s15 + $0x188] sm:$0xff]   ;;  %v4771_v22 = vld [vmem:[%s5288_s15 + $0x190] sm:$0xff]   ;;  %v4773_v33 = vld [vmem:[%s5288_s15 + $0x1e0] sm:$0xff]  }
  0x7f   : > { %v2869_v25 = vsel %vm2726_vm5, %v2862_v23, %v2868_v24  ;;  %v2863_v26 = vunpack.c.l.b16 %v2661_v39  ;;  %v1973_v54 = vmax.bf16 %v4759_v53, %v1972_v58  ;;  %v3148_v4 = vsel %vm2724_vm4, %v3141_v59, %v3147_v35  ;;  %v4774_v53 = vld [vmem:[%s5288_s15 + $0x1e8] sm:$0xff]   ;;  %v4777_v57 = vld [vmem:[%s5288_s15 + $0x240] sm:$0xff]  }
  0x80   : > { %v2662_v27 = vmax.bf16 %v5357_v5, %v5352_v60  ;;  %v3143_v50 = vunpack.c.l.b16 %v5345_v12  ;;  %v3149_v7 = vsel %vm2726_vm5, %v3142_v0, %v3148_v4  ;;  %v1961_v8 = vmax.bf16 %v4756_v45, %v1960_v2  ;;  %v4778_v0 = vld [vmem:[%s5288_s15 + $0x248] sm:$0xff]   ;;  %v4779_v4 = vld [vmem:[%s5288_s15 + $0x250] sm:$0xff]  }
  0x81   : > { %v2870_v29 = vsel %vm2728_vm6, %v2863_v26, %v2869_v25  ;;  %v1974_v9 = vmax.bf16 %v4760_v62, %v1973_v54  ;;  %v3144_v63 = vunpack.c.l.b16 %v5352_v60  ;;  %v3277_v13 = vunpack.c.l.b16 %v5291_v28  ;;  %v4772_v62 = vld [vmem:[%s5288_s15 + $0x198] sm:$0xff]  }
  0x82   : > { %v2864_v30 = vunpack.c.l.b16 %v2662_v27  ;;  %v3150_v10 = vsel %vm2728_vm6, %v3143_v50, %v3149_v7  ;;  %v1962_v48 = vunpack.i.l.bf16 %v1961_v8  ;;  %v1963_v12 = vunpack.i.h.bf16 %v1961_v8  ;;  %v4781_v50 = vld [vmem:[%s5288_s15 + $0x2a0] sm:$0xff]  }
  0x83   : > { %v1975_v16 = vunpack.i.l.bf16 %v1974_v9  ;;  %v1976_v19 = vunpack.i.h.bf16 %v1974_v9  ;;  %v3151_v20 = vsel %vm2730_vm7, %v3144_v63, %v3150_v10  ;;  %v3278_v60 = vunpack.c.l.b16 %v5309_v14 }
  0x84   : > { %v2871_v36 = vsel %vm2730_vm7, %v2864_v30, %v2870_v29  ;;  %v3279_v23 = vunpack.c.l.b16 %v5317_v32  ;;  %v3280_v24 = vunpack.c.l.b16 %v5330_v55  ;;  %v3152_v25 = vpack.c.b16 %v3151_v20, %v3151_v20  ;;  %v4780_v20 = vld [vmem:[%s5288_s15 + $0x258] sm:$0xff]  }
  0x85   : > { %v2872_v37 = vpack.c.b16 %v2871_v36, %v2871_v36  ;;  %v3285_v39 = vsel %vm2718_vm1, %v3278_v60, %v3277_v13  ;;  %v3281_v26 = vunpack.c.l.b16 %v5338_v3  ;;  %v1964_v28 = vmax.f32 %v1962_v48, %v1963_v12  ;;  %v4783_v13 = vld [vmem:[%s5288_s15 + $0x2b0] sm:$0xff]  }
  0x86   : > { %v3286_v27 = vsel %vm2720_vm2, %v3279_v23, %v3285_v39  ;;  %v1977_v29 = vmax.f32 %v1975_v16, %v1976_v19  ;;  %v3282_v14 = vunpack.c.l.b16 %v5341_v11  ;;  %v3283_v32 = vunpack.c.l.b16 %v5350_v21 }
  0x87   : > { %4435 = vmatmul.mubr.bf16.vlgmr.msra.gmra.mrb[0].mxu1 %v2872_v37  ;;  %v3287_v30 = vsel %vm2722_vm3, %v3280_v24, %v3286_v27  ;;  %v1985_v3 = vmax.bf16 %v4762_v18, %v4761_v17  ;;  %v4763_v37 = vld [vmem:[%s5288_s15 + $0xd0] sm:$0xff]   ;;  %v1965_v21 = vrot.slane %v1964_v28, 4  ;;  %v2011_v45 = vmax.bf16 %v4770_v47, %v4769_v46 }
  0x88   : > { %4459 = vmatpush3.bf16.msra.mxu1 %v4738_v31  ;;  %4474 = vmatprep.mubr.msk.bf16.mxu1 %vm4946_vm0, %v4945_v1  ;;  %v3288_v55 = vsel %vm2724_vm4, %v3281_v26, %v3287_v30  ;;  %v3284_v31 = vunpack.c.l.b16 %v5357_v5  ;;  %v1978_v41 = vrot.slane %v1977_v29, 4  ;;  %v4766_v5 = vld [vmem:[%s5288_s15 + $0x128] sm:$0xff]   ;;  %v2024_v54 = vmax.bf16 %v4774_v53, %v4773_v33 }
  0x89   : > { %4460 = vmatprep.subr.bf16.mxu1 %v4945_v1  ;;  %v3289_v36 = vsel %vm2726_vm5, %v3282_v14, %v3288_v55  ;;  %v1966_v49 = vmax.f32 %v1964_v28, %v1965_v21  ;;  %v1986_v52 = vmax.bf16 %v4763_v37, %v1985_v3  ;;  %v2037_v12 = vmax.bf16 %v4778_v0, %v4777_v57  ;;  %v4786_v28 = vld [vmem:[%s5288_s15 + $0x28] sm:$0xff]  }
  0x8a   : > { %v3290_v11 = vsel %vm2728_vm6, %v3283_v32, %v3289_v36  ;;  %v4790_v14 = vld [vmem:[%s5288_s15 + $0x88] sm:$0xff]  }
  0x8b   : > { %v5441_v42 = vsel %vm2730_vm7, %v3284_v31, %v3290_v11  ;;  %v1967_v58 = vrot.slane %v1966_v49, 2  ;;  %v2038_v27 = vmax.bf16 %v4779_v4, %v2037_v12  ;;  %v4784_v31 = vld [vmem:[%s5288_s15 + $0x2b8] sm:$0xff]  }
  0x8c   : > { %4461 = vmatpush3.bf16.msra.mxu1 %v4740_v38  ;;  %v4764_v38 = vld [vmem:[%s5288_s15 + $0xd8] sm:$0xff]  }
  0x8d   : > { %4462 = vmatprep.subr.bf16.mxu1 %v4945_v1  ;;  %v1987_v35 = vmax.bf16 %v4764_v38, %v1986_v52  ;;  %v1968_v7 = vmax.f32 %v1966_v49, %v1967_v58 }
  0x8f   : > { %v1988_v9 = vunpack.i.l.bf16 %v1987_v35  ;;  %v1989_v63 = vunpack.i.h.bf16 %v1987_v35  ;;  %v1969_v16 = vrot.slane %v1968_v7, 1 }
  0x90   : > { %4463 = vmatpush3.bf16.msra.mxu1 %v4742_v40  ;;  %v4765_v40 = vld [vmem:[%s5288_s15 + $0x120] sm:$0xff]  }
  0x91   : > { %4464 = vmatprep.subr.bf16.mxu1 %v4945_v1  ;;  %v1998_v56 = vmax.bf16 %v4766_v5, %v4765_v40  ;;  %v1990_v18 = vmax.f32 %v1988_v9, %v1989_v63  ;;  %v1970_v36 = vmax.f32 %v1968_v7, %v1969_v16  ;;  %v4787_v40 = vld [vmem:[%s5288_s15 + $0x30] sm:$0xff]   ;;  %v2039_v5 = vmax.bf16 %v4780_v20, %v2038_v27 }
  0x92   : > { %v4795_v27 = vld [vmem:[%s5288_s15 + $0xf0] sm:$0xff]  }
  0x93   : > { %v1999_v2 = vmax.bf16 %v4767_v43, %v1998_v56  ;;  %v1991_v26 = vrot.slane %v1990_v18, 4  ;;  %v2040_v33 = vunpack.i.l.bf16 %v2039_v5  ;;  %v2041_v53 = vunpack.i.h.bf16 %v2039_v5  ;;  %v4788_v56 = vld [vmem:[%s5288_s15 + $0x38] sm:$0xff]  }
  0x94   : > { %4465 = vmatpush3.bf16.msra.mxu1 %v4744_v51  ;;  %v1979_v51 = vmax.f32 %v1977_v29, %v1978_v41  ;;  %v4789_v29 = vld [vmem:[%s5288_s15 + $0x80] sm:$0xff]   ;;  %v5472_v63 = vpack.i.bf16 %v1970_v36, %v1970_v36 }
  0x95   : > { %4466 = vmatprep.subr.bf16.mxu1 %v4945_v1  ;;  %v2000_v10 = vmax.bf16 %v4768_v44, %v1999_v2  ;;  %v1992_v37 = vmax.f32 %v1990_v18, %v1991_v26  ;;  %v4791_v44 = vld [vmem:[%s5288_s15 + $0x90] sm:$0xff]   ;;  %v4793_v18 = vld [vmem:[%s5288_s15 + $0xe0] sm:$0xff]  }
  0x96   : > { %v1980_v59 = vrot.slane %v1979_v51, 2 }
  0x97   : > { %v2001_v60 = vunpack.i.l.bf16 %v2000_v10  ;;  %v2002_v23 = vunpack.i.h.bf16 %v2000_v10  ;;  %v1993_v46 = vrot.slane %v1992_v37, 2 }
  0x98   : > { %4467 = vmatpush3.bf16.msra.mxu1 %v4746_v34  ;;  %v4775_v34 = vld [vmem:[%s5288_s15 + $0x1f0] sm:$0xff]   ;;  %v1981_v8 = vmax.f32 %v1979_v51, %v1980_v59  ;;  %v2268_v51 = vmax.bf16 %v4790_v14, %v4789_v29  ;;  %v4792_v59 = vld [vmem:[%s5288_s15 + $0x98] sm:$0xff]   ;;  %v4798_v29 = vld [vmem:[%s5288_s15 + $0x148] sm:$0xff]  }
  0x99   : > { %4468 = vmatprep.subr.bf16.mxu1 %v4945_v1  ;;  %v2025_v48 = vmax.bf16 %v4775_v34, %v2024_v54  ;;  %v2003_v30 = vmax.f32 %v2001_v60, %v2002_v23  ;;  %v1994_v34 = vmax.f32 %v1992_v37, %v1993_v46  ;;  %v4805_v46 = vld [vmem:[%s5288_s15 + $0x200] sm:$0xff]  }
  0x9a   : > { %v1982_v17 = vrot.slane %v1981_v8, 1  ;;  %v2269_v0 = vmax.bf16 %v4791_v44, %v2268_v51 }
  0x9b   : > { %v2004_v21 = vrot.slane %v2003_v30, 4  ;;  %v1995_v2 = vrot.slane %v1994_v34, 1 }
  0x9c   : > { %4469 = vmatpush3.bf16.msra.mxu1 %v4748_v61  ;;  %v4776_v61 = vld [vmem:[%s5288_s15 + $0x1f8] sm:$0xff]   ;;  %v1983_v11 = vmax.f32 %v1981_v8, %v1982_v17 }
  0x9d   : > { %4470 = vmatprep.subr.bf16.mxu1 %v4945_v1  ;;  %v2026_v39 = vmax.bf16 %v4776_v61, %v2025_v48  ;;  %v2005_v52 = vmax.f32 %v2003_v30, %v2004_v21  ;;  %v2042_v61 = vmax.f32 %v2040_v33, %v2041_v53  ;;  %v2270_v48 = vmax.bf16 %v4792_v59, %v2269_v0  ;;  %v4801_v21 = vld [vmem:[%s5288_s15 + $0x1a0] sm:$0xff]   ;;  %v4803_v33 = vld [vmem:[%s5288_s15 + $0x1b0] sm:$0xff]  }
  0x9e   : > { %v5480_v36 = vpack.i.bf16 %v1983_v11, %v1983_v11  ;;  %v4807_v59 = vld [vmem:[%s5288_s15 + $0x210] sm:$0xff]   ;;  %v4809_v0 = vld [vmem:[%s5288_s15 + $0x260] sm:$0xff]  }
  0x9f   : > { %v2027_v3 = vunpack.i.l.bf16 %v2026_v39  ;;  %v2028_v38 = vunpack.i.h.bf16 %v2026_v39  ;;  %v2043_v8 = vrot.slane %v2042_v61, 4  ;;  %v2271_v14 = vunpack.i.l.bf16 %v2270_v48 }
  0xa0   : > { %4471 = vmatpush3.bf16.msra.mxu1 %v4750_v6  ;;  %v4782_v6 = vld [vmem:[%s5288_s15 + $0x2a8] sm:$0xff]  }
  0xa1   : > { %4472 = vmatprep.subr.bf16.mxu1 %v4945_v1  ;;  %v2050_v19 = vmax.bf16 %v4782_v6, %v4781_v50  ;;  %v2029_v47 = vmax.f32 %v2027_v3, %v2028_v38  ;;  %v2044_v17 = vmax.f32 %v2042_v61, %v2043_v8  ;;  %v4808_v61 = vld [vmem:[%s5288_s15 + $0x218] sm:$0xff]  }
  0xa3   : > { %v2051_v43 = vmax.bf16 %v4783_v13, %v2050_v19  ;;  %v2030_v57 = vrot.slane %v2029_v47, 4  ;;  %v4794_v19 = vld [vmem:[%s5288_s15 + $0xe8] sm:$0xff]   ;;  %v1996_v13 = vmax.f32 %v1994_v34, %v1995_v2  ;;  %v2045_v26 = vrot.slane %v2044_v17, 2 }
  0xa4   : > { %4473 = vmatpush3.bf16.msra.mxu1 %v4752_v15  ;;  %v2012_v15 = vmax.bf16 %v4771_v22, %v2011_v45  ;;  %v2006_v45 = vrot.slane %v2005_v52, 2  ;;  %v2281_v5 = vmax.bf16 %v4794_v19, %v4793_v18  ;;  %v4811_v18 = vld [vmem:[%s5288_s15 + $0x270] sm:$0xff]  }
  0xa5   : > { %4498 = vmatprep.subr.bf16.mxu1 %v4945_v1  ;;  %v2052_v58 = vmax.bf16 %v4784_v31, %v2051_v43  ;;  %v2031_v54 = vmax.f32 %v2029_v47, %v2030_v57  ;;  %v2272_v31 = vunpack.i.h.bf16 %v2270_v48  ;;  %v2046_v38 = vmax.f32 %v2044_v17, %v2045_v26  ;;  %v4806_v47 = vld [vmem:[%s5288_s15 + $0x208] sm:$0xff]  }
  0xa6   : > { %v2013_v24 = vmax.bf16 %v4772_v62, %v2012_v15  ;;  %v2007_v6 = vmax.f32 %v2005_v52, %v2006_v45  ;;  %v5485_v43 = vpack.i.bf16 %v1996_v13, %v1996_v13  ;;  %v2282_v53 = vmax.bf16 %v4795_v27, %v2281_v5 }
  0xa7   : > { %4475 = vmatmul.mubr.bf16.vlgmr.msra.gmra.mrb[4].mxu1 %v3152_v25  ;;  %v4785_v25 = vld [vmem:[%s5288_s15 + $0x20] sm:$0xff]   ;;  %v2053_v4 = vunpack.i.l.bf16 %v2052_v58  ;;  %v2054_v50 = vunpack.i.h.bf16 %v2052_v58  ;;  %v2032_v10 = vrot.slane %v2031_v54, 2  ;;  %v2273_v51 = vmax.f32 %v2271_v14, %v2272_v31  ;;  %v4804_v58 = vld [vmem:[%s5288_s15 + $0x1b8] sm:$0xff]  }
  0xa8   : > { %4514 = vmatprep.mubr.msk.bf16.mxu1 %vm4946_vm0, %v4945_v1  ;;  %v2014_v32 = vunpack.i.l.bf16 %v2013_v24  ;;  %v2015_v55 = vunpack.i.h.bf16 %v2013_v24  ;;  %v2255_v49 = vmax.bf16 %v4786_v28, %v4785_v25  ;;  %v2008_v12 = vrot.slane %v2007_v6, 1  ;;  %v4797_v28 = vld [vmem:[%s5288_s15 + $0x140] sm:$0xff]  }
  0xa9   : > { %v2055_v15 = vmax.f32 %v2053_v4, %v2054_v50  ;;  %v2033_v60 = vmax.f32 %v2031_v54, %v2032_v10  ;;  %v2047_v34 = vrot.slane %v2046_v38, 1  ;;  %v2274_v45 = vrot.slane %v2273_v51, 4  ;;  %v4850_v10 = vld [vmem:[%s5882_s3 + $0x140] sm:$0xff]  }
  0xaa   : > { %v2016_v41 = vmax.f32 %v2014_v32, %v2015_v55  ;;  %v2256_v35 = vmax.bf16 %v4787_v40, %v2255_v49  ;;  %v2009_v39 = vmax.f32 %v2007_v6, %v2008_v12  ;;  %v4796_v55 = vld [vmem:[%s5288_s15 + $0xf8] sm:$0xff]   ;;  %v4799_v40 = vld [vmem:[%s5288_s15 + $0x150] sm:$0xff]   ;;  %v4810_v6 = vld [vmem:[%s5288_s15 + $0x268] sm:$0xff]   ;;  %4499 = vmatpush3.bf16.msra.mxu1 %v4850_v10 }
  0xab   : > { %v2056_v23 = vrot.slane %v2055_v15, 4  ;;  %v2034_v30 = vrot.slane %v2033_v60, 1  ;;  %v2283_v2 = vmax.bf16 %v4796_v55, %v2282_v53  ;;  %v2275_v8 = vmax.f32 %v2273_v51, %v2274_v45  ;;  %4500 = vmatprep.subr.bf16.mxu1 %v4945_v1  ;;  %v4817_v55 = vld [vmem:[%s5288_s15 + $0x40] sm:$0xff]   ;;  %v4819_v53 = vld [vmem:[%s5288_s15 + $0x50] sm:$0xff]  }
  0xac   : > { %v2017_v22 = vrot.slane %v2016_v41, 4  ;;  %v2257_v9 = vmax.bf16 %v4788_v56, %v2256_v35  ;;  %v5489_v11 = vpack.i.bf16 %v2009_v39, %v2009_v39  ;;  %v2294_v56 = vmax.bf16 %v4798_v29, %v4797_v28  ;;  %v4812_v29 = vld [vmem:[%s5288_s15 + $0x278] sm:$0xff]  }
  0xad   : > { %v2057_v32 = vmax.f32 %v2055_v15, %v2056_v23  ;;  %v2035_v52 = vmax.f32 %v2033_v60, %v2034_v30  ;;  %v2284_v48 = vunpack.i.l.bf16 %v2283_v2  ;;  %v2285_v12 = vunpack.i.h.bf16 %v2283_v2  ;;  %v4852_v60 = vld [vmem:[%s5882_s3 + $0x148] sm:$0xff]   ;;  %v4813_v23 = vld [vmem:[%s5288_s15 + $0x2c0] sm:$0xff]  }
  0xae   : > { %v2018_v62 = vmax.f32 %v2016_v41, %v2017_v22  ;;  %v2258_v20 = vunpack.i.l.bf16 %v2257_v9  ;;  %v2259_v24 = vunpack.i.h.bf16 %v2257_v9  ;;  %v4802_v41 = vld [vmem:[%s5288_s15 + $0x1a8] sm:$0xff]   ;;  %v4800_v22 = vld [vmem:[%s5288_s15 + $0x158] sm:$0xff]   ;;  %v2295_v54 = vmax.bf16 %v4799_v40, %v2294_v56  ;;  %4501 = vmatpush3.bf16.msra.mxu1 %v4852_v60 }
  0xaf   : > { %v2058_v44 = vrot.slane %v2057_v32, 2  ;;  %v2307_v4 = vmax.bf16 %v4802_v41, %v4801_v21  ;;  %v2320_v9 = vmax.bf16 %v4806_v47, %v4805_v46  ;;  %v5503_v15 = vpack.i.bf16 %v2035_v52, %v2035_v52  ;;  %v4818_v21 = vld [vmem:[%s5288_s15 + $0x48] sm:$0xff]   ;;  %v4854_v47 = vld [vmem:[%s5882_s3 + $0x150] sm:$0xff]   ;;  %4502 = vmatprep.subr.bf16.mxu1 %v4945_v1 }
  0xb0   : > { %v2019_v7 = vrot.slane %v2018_v62, 2  ;;  %v2260_v3 = vmax.f32 %v2258_v20, %v2259_v24  ;;  %v2048_v17 = vmax.f32 %v2046_v38, %v2047_v34  ;;  %v2276_v20 = vrot.slane %v2275_v8, 2  ;;  %v4814_v24 = vld [vmem:[%s5288_s15 + $0x2c8] sm:$0xff]  }
  0xb1   : > { %v2059_v57 = vmax.f32 %v2057_v32, %v2058_v44  ;;  %v2308_v13 = vmax.bf16 %v4803_v33, %v2307_v4  ;;  %v2286_v39 = vmax.f32 %v2284_v48, %v2285_v12  ;;  %v2321_v27 = vmax.bf16 %v4807_v59, %v2320_v9  ;;  %v4820_v59 = vld [vmem:[%s5288_s15 + $0x58] sm:$0xff]  }
  0xb2   : > { %v2020_v16 = vmax.f32 %v2018_v62, %v2019_v7  ;;  %v2261_v49 = vrot.slane %v2260_v3, 4  ;;  %v2277_v30 = vmax.f32 %v2275_v8, %v2276_v20  ;;  %v2333_v40 = vmax.bf16 %v4810_v6, %v4809_v0  ;;  %4503 = vmatpush3.bf16.msra.mxu1 %v4854_v47  ;;  %v4856_v8 = vld [vmem:[%s5882_s3 + $0x158] sm:$0xff]  }
  0xb3   : > { %v2060_v50 = vrot.slane %v2059_v57, 1  ;;  %v2309_v32 = vmax.bf16 %v4804_v58, %v2308_v13  ;;  %v2287_v31 = vrot.slane %v2286_v39, 4  ;;  %v2322_v38 = vmax.bf16 %v4808_v61, %v2321_v27  ;;  %4504 = vmatprep.subr.bf16.mxu1 %v4945_v1 }
  0xb4   : > { %v2021_v25 = vrot.slane %v2020_v16, 1  ;;  %v2262_v35 = vmax.f32 %v2260_v3, %v2261_v49  ;;  %v4815_v3 = vld [vmem:[%s5288_s15 + $0x2d0] sm:$0xff]   ;;  %v5516_v41 = vpack.i.bf16 %v2048_v17, %v2048_v17  ;;  %v2278_v5 = vrot.slane %v2277_v30, 1  ;;  %v4816_v49 = vld [vmem:[%s5288_s15 + $0x2d8] sm:$0xff]  }
  0xb5   : > { %v2061_v28 = vmax.f32 %v2059_v57, %v2060_v50  ;;  %v2310_v44 = vunpack.i.l.bf16 %v2309_v32  ;;  %v2311_v46 = vunpack.i.h.bf16 %v2309_v32  ;;  %v2288_v51 = vmax.f32 %v2286_v39, %v2287_v31  ;;  %v4825_v39 = vld [vmem:[%s5288_s15 + $0x100] sm:$0xff]  }
  0xb6   : > { %v2022_v37 = vmax.f32 %v2020_v16, %v2021_v25  ;;  %v2263_v7 = vrot.slane %v2262_v35, 2  ;;  %v2296_v16 = vmax.bf16 %v4800_v22, %v2295_v54  ;;  %v2323_v22 = vunpack.i.l.bf16 %v2322_v38  ;;  %v4822_v54 = vld [vmem:[%s5288_s15 + $0xa8] sm:$0xff]   ;;  %4505 = vmatpush3.bf16.msra.mxu1 %v4856_v8 }
  0xb7   : > { %v2324_v33 = vunpack.i.h.bf16 %v2322_v38  ;;  %v5524_v56 = vpack.i.bf16 %v2061_v28, %v2061_v28  ;;  %v2312_v57 = vmax.f32 %v2310_v44, %v2311_v46  ;;  %v2334_v58 = vmax.bf16 %v4811_v18, %v2333_v40  ;;  %v4824_v28 = vld [vmem:[%s5288_s15 + $0xb8] sm:$0xff]   ;;  %v4829_v38 = vld [vmem:[%s5288_s15 + $0x160] sm:$0xff]   ;;  %4506 = vmatprep.subr.bf16.mxu1 %v4945_v1  ;;  %v4830_v44 = vld [vmem:[%s5288_s15 + $0x168] sm:$0xff]  }
  0xb8   : > { %v5495_v62 = vpack.i.bf16 %v2022_v37, %v2022_v37  ;;  %v2264_v19 = vmax.f32 %v2262_v35, %v2263_v7  ;;  %v2297_v25 = vunpack.i.l.bf16 %v2296_v16  ;;  %v2298_v26 = vunpack.i.h.bf16 %v2296_v16  ;;  %v4821_v35 = vld [vmem:[%s5288_s15 + $0xa0] sm:$0xff]   ;;  %v4834_v8 = vld [vmem:[%s5288_s15 + $0x1c8] sm:$0xff]  }
  0xb9   : > { %v2289_v45 = vrot.slane %v2288_v51, 2  ;;  %v2325_v0 = vmax.f32 %v2323_v22, %v2324_v33  ;;  %v2346_v2 = vmax.bf16 %v4814_v24, %v4813_v23  ;;  %v2279_v4 = vmax.f32 %v2277_v30, %v2278_v5  ;;  %v4858_v30 = vld [vmem:[%s5882_s3 + $0x160] sm:$0xff]  }
  0xba   : > { %v2265_v14 = vrot.slane %v2264_v19, 1  ;;  %v2299_v37 = vmax.f32 %v2297_v25, %v2298_v26  ;;  %v2313_v50 = vrot.slane %v2312_v57, 4  ;;  %v2335_v6 = vmax.bf16 %v4812_v29, %v2334_v58  ;;  %v4826_v25 = vld [vmem:[%s5288_s15 + $0x108] sm:$0xff]   ;;  %v4831_v58 = vld [vmem:[%s5288_s15 + $0x170] sm:$0xff]   ;;  %4507 = vmatpush3.bf16.msra.mxu1 %v4858_v30  ;;  %v4841_v30 = vld [vmem:[%s5288_s15 + $0x280] sm:$0xff]  }
  0xbb   : > { %v2551_v7 = vmax.bf16 %v4818_v21, %v4817_v55  ;;  %v2290_v9 = vmax.f32 %v2288_v51, %v2289_v45  ;;  %v2326_v48 = vrot.slane %v2325_v0, 4  ;;  %v2347_v12 = vmax.bf16 %v4815_v3, %v2346_v2  ;;  %4508 = vmatprep.subr.bf16.mxu1 %v4945_v1 }
  0xbc   : > { %v2300_v52 = vrot.slane %v2299_v37, 4  ;;  %v2266_v34 = vmax.f32 %v2264_v19, %v2265_v14  ;;  %v2314_v16 = vmax.f32 %v2312_v57, %v2313_v50  ;;  %v2336_v17 = vunpack.i.l.bf16 %v2335_v6  ;;  %v4823_v19 = vld [vmem:[%s5288_s15 + $0xb0] sm:$0xff]  }
  0xbd   : > { %v2337_v18 = vunpack.i.h.bf16 %v2335_v6  ;;  %v2552_v20 = vmax.bf16 %v4819_v53, %v2551_v7  ;;  %v2291_v13 = vrot.slane %v2290_v9, 1  ;;  %v2327_v23 = vmax.f32 %v2325_v0, %v2326_v48  ;;  %v4832_v7 = vld [vmem:[%s5288_s15 + $0x178] sm:$0xff]  }
  0xbe   : > { %v2301_v61 = vmax.f32 %v2299_v37, %v2300_v52  ;;  %v2348_v24 = vmax.bf16 %v4816_v49, %v2347_v12  ;;  %v2315_v26 = vrot.slane %v2314_v16, 2  ;;  %v2564_v14 = vmax.bf16 %v4822_v54, %v4821_v35  ;;  %v4827_v37 = vld [vmem:[%s5288_s15 + $0x110] sm:$0xff]   ;;  %v4828_v52 = vld [vmem:[%s5288_s15 + $0x118] sm:$0xff]   ;;  %v4860_v35 = vld [vmem:[%s5882_s3 + $0x168] sm:$0xff]  }
  0xbf   : > { %v2338_v27 = vmax.f32 %v2336_v17, %v2337_v18  ;;  %v2553_v29 = vmax.bf16 %v4820_v59, %v2552_v20  ;;  %v2292_v32 = vmax.f32 %v2290_v9, %v2291_v13  ;;  %v2328_v3 = vrot.slane %v2327_v23, 2  ;;  %v4835_v9 = vld [vmem:[%s5288_s15 + $0x1d0] sm:$0xff]   ;;  %4509 = vmatpush3.bf16.msra.mxu1 %v4860_v35 }
  0xc0   : > { %v2302_v10 = vrot.slane %v2301_v61, 2  ;;  %v2349_v31 = vunpack.i.l.bf16 %v2348_v24  ;;  %v2316_v40 = vmax.f32 %v2314_v16, %v2315_v26  ;;  %v2350_v5 = vunpack.i.h.bf16 %v2348_v24  ;;  %v4862_v18 = vld [vmem:[%s5882_s3 + $0x170] sm:$0xff]   ;;  %v4836_v24 = vld [vmem:[%s5288_s15 + $0x1d8] sm:$0xff]   ;;  %4510 = vmatprep.subr.bf16.mxu1 %v4945_v1 }
  0xc1   : > { %v2339_v21 = vrot.slane %v2338_v27, 4  ;;  %v2554_v46 = vunpack.i.l.bf16 %v2553_v29  ;;  %v5544_v47 = vpack.i.bf16 %v2266_v34, %v2266_v34  ;;  %v2329_v51 = vmax.f32 %v2327_v23, %v2328_v3 }
  0xc2   : > { %v2303_v60 = vmax.f32 %v2301_v61, %v2302_v10  ;;  %v2555_v22 = vunpack.i.h.bf16 %v2553_v29  ;;  %v2317_v33 = vrot.slane %v2316_v40, 1  ;;  %v2351_v57 = vmax.f32 %v2349_v31, %v2350_v5  ;;  %v4833_v61 = vld [vmem:[%s5288_s15 + $0x1c0] sm:$0xff]  }
  0xc3   : > { %v2340_v53 = vmax.f32 %v2338_v27, %v2339_v21  ;;  %v2565_v59 = vmax.bf16 %v4823_v19, %v2564_v14  ;;  %v5551_v34 = vpack.i.bf16 %v2279_v4, %v2279_v4  ;;  %v2330_v45 = vrot.slane %v2329_v51, 1  ;;  %v4837_v4 = vld [vmem:[%s5288_s15 + $0x220] sm:$0xff]   ;;  %v4839_v14 = vld [vmem:[%s5288_s15 + $0x230] sm:$0xff]   ;;  %v4864_v21 = vld [vmem:[%s5882_s3 + $0x178] sm:$0xff]   ;;  %4511 = vmatpush3.bf16.msra.mxu1 %v4862_v18 }
  0xc4   : > { %v2304_v55 = vrot.slane %v2303_v60, 1  ;;  %v2556_v0 = vmax.f32 %v2554_v46, %v2555_v22  ;;  %v2577_v2 = vmax.bf16 %v4826_v25, %v4825_v39  ;;  %v5555_v54 = vpack.i.bf16 %v2292_v32, %v2292_v32  ;;  %v4838_v39 = vld [vmem:[%s5288_s15 + $0x228] sm:$0xff]   ;;  %4512 = vmatprep.subr.bf16.mxu1 %v4945_v1 }
  0xc5   : > { %v2341_v50 = vrot.slane %v2340_v53, 2  ;;  %v2352_v6 = vrot.slane %v2351_v57, 4  ;;  %v2566_v10 = vmax.bf16 %v4824_v28, %v2565_v59  ;;  %v2590_v17 = vmax.bf16 %v4830_v44, %v4829_v38  ;;  %v4842_v32 = vld [vmem:[%s5288_s15 + $0x288] sm:$0xff]  }
  0xc6   : > { %v2305_v49 = vmax.f32 %v2303_v60, %v2304_v55  ;;  %v2557_v12 = vrot.slane %v2556_v0, 4  ;;  %v2578_v16 = vmax.bf16 %v4827_v37, %v2577_v2  ;;  %v2318_v19 = vmax.f32 %v2316_v40, %v2317_v33 }
  0xc7   : > { %v2342_v20 = vmax.f32 %v2340_v53, %v2341_v50  ;;  %v2353_v13 = vmax.f32 %v2351_v57, %v2352_v6  ;;  %v2567_v60 = vunpack.i.l.bf16 %v2566_v10  ;;  %v2331_v23 = vmax.f32 %v2329_v51, %v2330_v45  ;;  %v4843_v45 = vld [vmem:[%s5288_s15 + $0x290] sm:$0xff]   ;;  %4513 = vmatpush3.bf16.msra.mxu1 %v4864_v21  ;;  %v4848_v21 = vld [vmem:[%s5288_s15 + $0x2f8] sm:$0xff]  }
  0xc8   : > { %v5560_v48 = vpack.i.bf16 %v2305_v49, %v2305_v49  ;;  %v2558_v25 = vmax.f32 %v2556_v0, %v2557_v12  ;;  %v2568_v26 = vunpack.i.h.bf16 %v2566_v10  ;;  %v2579_v27 = vmax.bf16 %v4828_v52, %v2578_v16  ;;  %v4845_v12 = vld [vmem:[%s5288_s15 + $0x2e0] sm:$0xff]   ;;  %v4846_v16 = vld [vmem:[%s5288_s15 + $0x2e8] sm:$0xff]   ;;  %4538 = vmatprep.subr.bf16.mxu1 %v4945_v1 }
  0xc9   : > { %v2343_v28 = vrot.slane %v2342_v20, 1  ;;  %v2354_v29 = vrot.slane %v2353_v13, 2  ;;  %v2591_v55 = vmax.bf16 %v4831_v58, %v2590_v17  ;;  %v2603_v3 = vmax.bf16 %v4834_v8, %v4833_v61  ;;  %v4840_v58 = vld [vmem:[%s5288_s15 + $0x238] sm:$0xff]  }
  0xca   : > { %v2559_v31 = vrot.slane %v2558_v25, 2  ;;  %v2569_v37 = vmax.f32 %v2567_v60, %v2568_v26  ;;  %v2580_v38 = vunpack.i.l.bf16 %v2579_v27  ;;  %v2581_v40 = vunpack.i.h.bf16 %v2579_v27 }
  0xcb   : > { %v2344_v5 = vmax.f32 %v2342_v20, %v2343_v28  ;;  %v2355_v44 = vmax.f32 %v2353_v13, %v2354_v29  ;;  %v2592_v46 = vmax.bf16 %v4832_v7, %v2591_v55  ;;  %v2604_v49 = vmax.bf16 %v4835_v9, %v2603_v3  ;;  %v4847_v28 = vld [vmem:[%s5288_s15 + $0x2f0] sm:$0xff]  }
  0xcc   : > { %v2560_v51 = vmax.f32 %v2558_v25, %v2559_v31  ;;  %v2570_v52 = vrot.slane %v2569_v37, 4  ;;  %v2582_v22 = vmax.f32 %v2580_v38, %v2581_v40  ;;  %v2616_v33 = vmax.bf16 %v4838_v39, %v4837_v4  ;;  %v4844_v4 = vld [vmem:[%s5288_s15 + $0x298] sm:$0xff]   ;;  %s254_s15 = sand.u32 1, %s4935_s19  }
  0xcd   : > { %v5576_v53 = vpack.i.bf16 %v2318_v19, %v2318_v19  ;;  %v2356_v57 = vrot.slane %v2355_v44, 1  ;;  %v2593_v59 = vunpack.i.l.bf16 %v2592_v46  ;;  %v2594_v35 = vunpack.i.h.bf16 %v2592_v46  ;;  %s3906_s9 = sshll.u32 %s254_s15, 6  ;;  %s3805_s30 = scalar_lea.sflag [#allocation3], %s254_s15 }
  0xce   : > { %v2561_v61 = vrot.slane %v2560_v51, 1  ;;  %v2571_v0 = vmax.f32 %v2569_v37, %v2570_v52  ;;  %v2583_v2 = vrot.slane %v2582_v22, 4  ;;  %v2605_v50 = vmax.bf16 %v4836_v24, %v2604_v49  ;;  %s5694_s12 = scalar_lea.vmem [#allocation2], %s3906_s9 }
  0xcf   : > { %v5580_v6 = vpack.i.bf16 %v2331_v23, %v2331_v23  ;;  %v2595_v7 = vmax.f32 %v2593_v59, %v2594_v35  ;;  %v2617_v8 = vmax.bf16 %v4839_v14, %v2616_v33  ;;  %v2629_v9 = vmax.bf16 %v4842_v32, %v4841_v30  ;;  %s3819_s16 = sshll.u32 %s5694_s12, 4  ;;  %s5836_s16 = int_to_ptr.vmem [resolvable:$true] %s3819_s16 }
  0xd0   : > { %v5582_v10 = vpack.i.bf16 %v2344_v5, %v2344_v5  ;;  %v2572_v17 = vrot.slane %v2571_v0, 2  ;;  %v2584_v18 = vmax.f32 %v2582_v22, %v2583_v2  ;;  %v2606_v19 = vunpack.i.l.bf16 %v2605_v50  ;;  %s4881_s22 = scalar_lea.vmem %s5836_s16, 1024  ;;  %p4888_p0 = scmp.lt.s32.totalorder %s5836_s16, %s4886_s7 }
  0xd1   : > { %v2562_v20 = vmax.f32 %v2560_v51, %v2561_v61  ;;  %v2596_v13 = vrot.slane %v2595_v7, 4  ;;  %v2607_v60 = vunpack.i.h.bf16 %v2605_v50  ;;  %v2618_v23 = vmax.bf16 %v4840_v58, %v2617_v8  ;;  %p4882_p11 = scmp.ne.s32.totalorder %s5836_s16, %s4881_s22  ;;  %p4889_p1 = scmp.lt.s32.totalorder %s4887_s8, %s4881_s22 }
  0xd2   : > { %v2357_v24 = vmax.f32 %v2355_v44, %v2356_v57  ;;  %v2573_v39 = vmax.f32 %v2571_v0, %v2572_v17  ;;  %v2585_v25 = vrot.slane %v2584_v18, 2  ;;  %v2630_v26 = vmax.bf16 %v4843_v45, %v2629_v9 }
  0xd3   : > { %v2597_v29 = vmax.f32 %v2595_v7, %v2596_v13  ;;  %v2608_v14 = vmax.f32 %v2606_v19, %v2607_v60  ;;  %v2619_v30 = vunpack.i.l.bf16 %v2618_v23  ;;  %v2620_v32 = vunpack.i.h.bf16 %v2618_v23  ;;  %p4883_p12 = pnand %p4882_p11, %p5016_p5  ;;  %p4890_p2 = por %p4889_p1, %p4888_p0 }
  0xd4   : > { %v2574_v3 = vrot.slane %v2573_v39, 1  ;;  %v2586_v31 = vmax.f32 %v2584_v18, %v2585_v25  ;;  %v2631_v37 = vmax.bf16 %v4844_v4, %v2630_v26  ;;  %v2642_v38 = vmax.bf16 %v4846_v16, %v4845_v12 }
  0xd5   : > { %v5592_v5 = vpack.i.bf16 %v2562_v20, %v2562_v20  ;;  %v2598_v44 = vrot.slane %v2597_v29, 2  ;;  %v2609_v46 = vrot.slane %v2608_v14, 4  ;;  %v2621_v49 = vmax.f32 %v2619_v30, %v2620_v32  ;;  %p4884_p13 = pneg %p4883_p12 }
  0xd6   : > { %v2575_v52 = vmax.f32 %v2573_v39, %v2574_v3  ;;  %v2587_v22 = vrot.slane %v2586_v31, 1  ;;  %v2632_v33 = vunpack.i.l.bf16 %v2631_v37  ;;  %v2633_v57 = vunpack.i.h.bf16 %v2631_v37 }
  0xd7   : > { %v2599_v58 = vmax.f32 %v2597_v29, %v2598_v44  ;;  %v2610_v59 = vmax.f32 %v2608_v14, %v2609_v46  ;;  %v2622_v35 = vrot.slane %v2621_v49, 4  ;;  %v2643_v45 = vmax.bf16 %v4847_v28, %v2642_v38  ;;  %p4891_p3 = pnand %p4890_p2, %p4884_p13 }
  0xd8   : > { %v5594_v61 = vpack.i.bf16 %v2575_v52, %v2575_v52  ;;  %v2588_v0 = vmax.f32 %v2586_v31, %v2587_v22  ;;  %v2634_v2 = vmax.f32 %v2632_v33, %v2633_v57  ;;  %v2663_v50 = vmax.bf16 %v5544_v47, %v5472_v63 }
  0xd9   : > { %v2600_v7 = vrot.slane %v2599_v58, 1  ;;  %v2611_v8 = vrot.slane %v2610_v59, 2  ;;  %v2623_v9 = vmax.f32 %v2621_v49, %v2622_v35  ;;  %v2644_v4 = vmax.bf16 %v4848_v21, %v2643_v45 }
  0xda   : > { %v5598_v12 = vpack.i.bf16 %v2588_v0, %v2588_v0  ;;  %v2635_v16 = vrot.slane %v2634_v2, 4  ;;  %v2664_v17 = vmax.bf16 %v5551_v34, %v5480_v36  ;;  %v2665_v18 = vmax.bf16 %v5555_v54, %v5485_v43 }
  0xdb   : > { %v2601_v19 = vmax.f32 %v2599_v58, %v2600_v7  ;;  %v2612_v20 = vmax.f32 %v2610_v59, %v2611_v8  ;;  %v2624_v13 = vrot.slane %v2623_v9, 2  ;;  %v2645_v60 = vunpack.i.l.bf16 %v2644_v4 }
  0xdc   : > { %v5604_v23 = vpack.i.bf16 %v2357_v24, %v2357_v24  ;;  %v2636_v39 = vmax.f32 %v2634_v2, %v2635_v16  ;;  %v2646_v25 = vunpack.i.h.bf16 %v2644_v4  ;;  %v2666_v26 = vmax.bf16 %v5560_v48, %v5489_v11 }
  0xdd   : > { %v5608_v28 = vpack.i.bf16 %v2601_v19, %v2601_v19  ;;  %v2613_v29 = vrot.slane %v2612_v20, 1  ;;  %v2625_v14 = vmax.f32 %v2623_v9, %v2624_v13  ;;  %v2667_v30 = vmax.bf16 %v5576_v53, %v5495_v62 }
  0xde   : > { %v2637_v32 = vrot.slane %v2636_v39, 2  ;;  %v2668_v3 = vmax.bf16 %v5580_v6, %v5503_v15  ;;  %v2671_v24 = vmax.bf16 %v2663_v50, %v5592_v5  ;;  %v2672_v38 = vmax.bf16 %v2664_v17, %v5594_v61 }
  0xdf   : > { %v2614_v31 = vmax.f32 %v2612_v20, %v2613_v29  ;;  %v2626_v37 = vrot.slane %v2625_v14, 1  ;;  %v2674_v46 = vmax.bf16 %v2666_v26, %v5608_v28  ;;  %v2669_v59 = vmax.bf16 %v5582_v10, %v5516_v41 }
  0xe0   : > { %v2638_v21 = vmax.f32 %v2636_v39, %v2637_v32  ;;  %v2997_v49 = vunpack.c.l.b16 %v2671_v24  ;;  %v2998_v22 = vunpack.c.l.b16 %v2672_v38  ;;  %v3417_v50 = vunpack.c.l.b16 %v5472_v63 }
  0xe1   : > { %v2627_v52 = vmax.f32 %v2625_v14, %v2626_v37  ;;  %v3000_v35 = vunpack.c.l.b16 %v2674_v46  ;;  %v3418_v4 = vunpack.c.l.b16 %v5480_v36  ;;  %v3419_v19 = vunpack.c.l.b16 %v5485_v43  ;;  %v4866_v46 = vld [vmem:[%s5882_s3 + $0x1c0] sm:$0xff]  }
  0xe2   : > { %v2639_v57 = vrot.slane %v2638_v21, 1  ;;  %v3005_v2 = vsel %vm2718_vm1, %v2998_v22, %v2997_v49  ;;  %v2670_v63 = vmax.bf16 %v5604_v23, %v5524_v56  ;;  %v3422_v36 = vunpack.c.l.b16 %v5503_v15 }
  0xe3   : > { %v5622_v45 = vpack.i.bf16 %v2627_v52, %v2627_v52  ;;  %v3425_v43 = vsel %vm2718_vm1, %v3418_v4, %v3417_v50  ;;  %v3557_v32 = vunpack.c.l.b16 %v5544_v47  ;;  %v3559_v24 = vunpack.c.l.b16 %v5555_v54 }
  0xe4   : > { %v2640_v7 = vmax.f32 %v2638_v21, %v2639_v57  ;;  %v3560_v38 = vunpack.c.l.b16 %v5560_v48  ;;  %v3562_v21 = vunpack.c.l.b16 %v5580_v6  ;;  %v3563_v49 = vunpack.c.l.b16 %v5582_v10 }
  0xe5   : > { %v2676_v16 = vmax.bf16 %v2668_v3, %v5622_v45  ;;  %v3698_v4 = vunpack.c.l.b16 %v5594_v61  ;;  %v3699_v61 = vunpack.c.l.b16 %v5598_v12 }
  0xe6   : > { %v5632_v20 = vpack.i.bf16 %v2640_v7, %v2640_v7  ;;  %v4868_v7 = vld [vmem:[%s5882_s3 + $0x1c8] sm:$0xff]  }
  0xe7   : > { %v3002_v39 = vunpack.c.l.b16 %v2676_v16  ;;  %v4851_v16 = vld [vmem:[%s5882_s3 + $0x108] sm:$0xff]  }
  0xe8   : > { %v2677_v29 = vmax.bf16 %v2669_v59, %v5632_v20 }
 0x119   : > { %v5588_v27 = vpop.f32.mrb[0].mxu0 }
 0x11a   : > { %v4416_v55 = vpop.f32.mrb[1].mxu0 }
 0x11b   : > { %v2819_v40 = vpop.f32.mrb[2].mxu0  ;;  %v2647_v55 = vmax.f32 %v2645_v60, %v2646_v25  ;;  %v3420_v60 = vunpack.c.l.b16 %v5489_v11  ;;  %v3421_v25 = vunpack.c.l.b16 %v5495_v62  ;;  %v3426_v11 = vsel %vm2720_vm2, %v3419_v19, %v3425_v43  ;;  %v4872_v19 = vld [vmem:[%s5882_s3 + $0x1d8] sm:$0xff]   ;;  %v4878_v43 = vld [vmem:[%s5882_s3 + $0x1f0] sm:$0xff]  }
 0x11c   : > { %v4417_v51 = vpop.f32.mrb[3].mxu0  ;;  %v2673_v40 = vmax.bf16 %v2665_v18, %v5598_v12  ;;  %v3424_v62 = vunpack.c.l.b16 %v5524_v56 }
 0x11d   : > { %v2648_v44 = vrot.slane %v2647_v55, 4  ;;  %v5618_v51 = vpack.i.bf16 %v2614_v31, %v2614_v31  ;;  %v3427_v15 = vsel %vm2722_vm3, %v3420_v60, %v3426_v11  ;;  %v3003_v31 = vunpack.c.l.b16 %v2677_v29  ;;  %v4855_v60 = vld [vmem:[%s5882_s3 + $0x118] sm:$0xff]   ;;  %v4861_v11 = vld [vmem:[%s5882_s3 + $0x130] sm:$0xff]  }
 0x11e   : > { %v2999_v33 = vunpack.c.l.b16 %v2673_v40  ;;  %v3428_v37 = vsel %vm2724_vm4, %v3421_v25, %v3427_v15  ;;  %v3702_v25 = vunpack.c.l.b16 %v5622_v45  ;;  %v3703_v29 = vunpack.c.l.b16 %v5632_v20 }
 0x11f   : > { %v2649_v58 = vmax.f32 %v2647_v55, %v2648_v44  ;;  %v2675_v0 = vmax.bf16 %v2667_v30, %v5618_v51  ;;  %v3423_v30 = vunpack.c.l.b16 %v5516_v41  ;;  %v3558_v55 = vunpack.c.l.b16 %v5551_v34 }
 0x120   : > { %v3006_v9 = vsel %vm2720_vm2, %v2999_v33, %v3005_v2  ;;  %v3429_v47 = vsel %vm2726_vm5, %v3422_v36, %v3428_v37  ;;  %v3561_v34 = vunpack.c.l.b16 %v5576_v53  ;;  %v4129_v53 = vld [vmem:[%s5883_s4] ss:$0 sm:$0xff]  ;;  %v3564_v33 = vunpack.c.l.b16 %v5604_v23  ;;  %v4871_v37 = vld [vmem:[%s5882_s3 + $0x198] sm:$0xff]  }
 0x121   : > { %v2650_v8 = vrot.slane %v2649_v58, 2  ;;  %v3001_v17 = vunpack.c.l.b16 %v2675_v0  ;;  %v3007_v18 = vsel %vm2722_vm3, %v3000_v35, %v3006_v9  ;;  %v3430_v56 = vsel %vm2728_vm6, %v3423_v30, %v3429_v47  ;;  %v4849_v2 = vld [vmem:[%s5882_s3 + $0x100] sm:$0xff]   ;;  %v4879_v47 = vld [vmem:[%s5882_s3 + $0x1b8] sm:$0xff]  }
 0x122   : > { %v3565_v54 = vsel %vm2718_vm1, %v3558_v55, %v3557_v32  ;;  %v3431_v48 = vsel %vm2730_vm7, %v3424_v62, %v3430_v56  ;;  %v2817_v35 = vadd.f32 %v4129_v53, %v5588_v27  ;;  %v3697_v9 = vunpack.c.l.b16 %v5592_v5  ;;  %v4870_v5 = vld [vmem:[%s5882_s3 + $0x1d0] sm:$0xff]   ;;  %v4857_v36 = vld [vmem:[%s5882_s3 + $0x120] sm:$0xff]   ;;  %v4880_v32 = vld [vmem:[%s5882_s3 + $0x1f8] sm:$0xff]  }
 0x123   : > { %v2651_v13 = vmax.f32 %v2649_v58, %v2650_v8  ;;  %v3008_v14 = vsel %vm2724_vm4, %v3001_v17, %v3007_v18  ;;  %v3566_v52 = vsel %vm2720_vm2, %v3559_v24, %v3565_v54  ;;  %v3432_v22 = vpack.c.b16 %v3431_v48, %v3431_v48  ;;  %v4853_v18 = vld [vmem:[%s5882_s3 + $0x110] sm:$0xff]   ;;  %v4865_v24 = vld [vmem:[%s5882_s3 + $0x180] sm:$0xff]  }
 0x124   : > { %v3009_v41 = vsel %vm2726_vm5, %v3002_v39, %v3008_v14  ;;  %v3567_v57 = vsel %vm2722_vm3, %v3560_v38, %v3566_v52  ;;  %v2822_v8 = vmax.f32 %v2817_v35, 0.0  ;;  %v3705_v17 = vsel %vm2718_vm1, %v3698_v4, %v3697_v9  ;;  %v4874_v39 = vld [vmem:[%s5882_s3 + $0x1e0] sm:$0xff]   ;;  %v4859_v14 = vld [vmem:[%s5882_s3 + $0x128] sm:$0xff]  }
 0x125   : > { %v2652_v26 = vrot.slane %v2651_v13, 1  ;;  %v3010_v6 = vsel %vm2728_vm6, %v3003_v31, %v3009_v41  ;;  %v3568_v59 = vsel %vm2724_vm4, %v3561_v34, %v3567_v57  ;;  %4515 = vmatmul.mubr.bf16.vlgmr.msra.gmra.mrb[8].mxu1 %v3432_v22  ;;  %v3706_v12 = vsel %vm2720_vm2, %v3699_v61, %v3705_v17  ;;  %v4867_v31 = vld [vmem:[%s5882_s3 + $0x188] sm:$0xff]   ;;  %v4873_v38 = vld [vmem:[%s5882_s3 + $0x1a0] sm:$0xff]   ;;  %v4877_v41 = vld [vmem:[%s5882_s3 + $0x1b0] sm:$0xff]  }
 0x126   : > { %v3569_v10 = vsel %vm2726_vm5, %v3562_v21, %v3568_v59  ;;  %4539 = vmatpush3.bf16.msra.mxu1 %v4866_v46  ;;  %4554 = vmatprep.mubr.msk.bf16.mxu1 %vm4946_vm0, %v4945_v1  ;;  %2823 = vst [vmem:[%s5694_s12] sm:$0xff] %v2822_v8  ;;  %v3292_v15 = vpack.c.b16 %v5441_v42, %v5441_v42  ;;  %v4869_v42 = vld [vmem:[%s5882_s3 + $0x190] sm:$0xff]   ;;  %v4155_v56 = vld [vmem:[%s5883_s4 + $0x1] ss:$0 sm:$0xff]  ;;  %v4233_v17 = vld [vmem:[%s5883_s4 + $0x4] ss:$0 sm:$0xff] }
 0x127   : > { %v2653_v3 = vmax.f32 %v2651_v13, %v2652_v26  ;;  %v3570_v23 = vsel %vm2728_vm6, %v3563_v49, %v3569_v10  ;;  %4540 = vmatprep.subr.bf16.mxu1 %v4945_v1  ;;  %v3700_v13 = vunpack.c.l.b16 %v5608_v28  ;;  %v4876_v26 = vld [vmem:[%s5882_s3 + $0x1e8] sm:$0xff]  }
 0x128   : > { %v5690_v27 = vsel %vm2730_vm7, %v3564_v33, %v3570_v23 }
 0x129   : > { %v5651_v40 = vpack.i.bf16 %v2653_v3, %v2653_v3  ;;  %v3707_v28 = vsel %vm2722_vm3, %v3700_v13, %v3706_v12  ;;  %v4863_v3 = vld [vmem:[%s5882_s3 + $0x138] sm:$0xff]   ;;  %v3572_v34 = vpack.c.b16 %v5690_v27, %v5690_v27 }
 0x12a   : > { %4541 = vmatpush3.bf16.msra.mxu1 %v4868_v7 }
 0x12b   : > { %v2678_v44 = vmax.bf16 %v2670_v63, %v5651_v40  ;;  %4542 = vmatprep.subr.bf16.mxu1 %v4945_v1  ;;  %v3701_v63 = vunpack.c.l.b16 %v5618_v51  ;;  %v3704_v30 = vunpack.c.l.b16 %v5651_v40  ;;  %v4875_v40 = vld [vmem:[%s5882_s3 + $0x1a8] sm:$0xff]  }
 0x12d   : > { %v3004_v58 = vunpack.c.l.b16 %v2678_v44  ;;  %v3708_v51 = vsel %vm2724_vm4, %v3701_v63, %v3707_v28 }
 0x12e   : > { %4543 = vmatpush3.bf16.msra.mxu1 %v4870_v5  ;;  %v3709_v45 = vsel %vm2726_vm5, %v3702_v25, %v3708_v51  ;;  %v4311_v5 = vld [vmem:[%s5883_s4 + $0x7] ss:$0 sm:$0xff] }
 0x12f   : > { %v3011_v0 = vsel %vm2730_vm7, %v3004_v58, %v3010_v6  ;;  %4544 = vmatprep.subr.bf16.mxu1 %v4945_v1  ;;  %v3710_v20 = vsel %vm2728_vm6, %v3703_v29, %v3709_v45  ;;  %v4259_v58 = vld [vmem:[%s5883_s4 + $0x5] ss:$0 sm:$0xff] }
 0x130   : > { %v3012_v50 = vpack.c.b16 %v3011_v0, %v3011_v0  ;;  %v3711_v55 = vsel %vm2730_vm7, %v3704_v30, %v3710_v20  ;;  %v4181_v0 = vld [vmem:[%s5883_s4 + $0x2] ss:$0 sm:$0xff] }
 0x131   : > { %v3712_v62 = vpack.c.b16 %v3711_v55, %v3711_v55 }
 0x132   : > { %4455 = vmatmul.mubr.bf16.vlgmr.msra.gmra.mrb[4].mxu0 %v3012_v50  ;;  %4545 = vmatpush3.bf16.msra.mxu1 %v4872_v19 }
 0x133   : > { %4479 = vmatpush3.bf16.msra.mxu0 %v4849_v2  ;;  %4494 = vmatprep.mubr.msk.bf16.mxu0 %vm4946_vm0, %v4945_v1 }
 0x134   : > { %4480 = vmatprep.subr.bf16.mxu0 %v4945_v1  ;;  %4546 = vmatprep.subr.bf16.mxu1 %v4945_v1 }
 0x136   : > { %4547 = vmatpush3.bf16.msra.mxu1 %v4874_v39 }
 0x137   : > { %4481 = vmatpush3.bf16.msra.mxu0 %v4851_v16  ;;  %4548 = vmatprep.subr.bf16.mxu1 %v4945_v1 }
 0x138   : > { %4482 = vmatprep.subr.bf16.mxu0 %v4945_v1 }
 0x13a   : > { %4549 = vmatpush3.bf16.msra.mxu1 %v4876_v26  ;;  %v4285_v26 = vld [vmem:[%s5883_s4 + $0x6] ss:$0 sm:$0xff] }
 0x13b   : > { %4483 = vmatpush3.bf16.msra.mxu0 %v4853_v18  ;;  %4550 = vmatprep.subr.bf16.mxu1 %v4945_v1 }
 0x13c   : > { %4484 = vmatprep.subr.bf16.mxu0 %v4945_v1 }
 0x13e   : > { %4551 = vmatpush3.bf16.msra.mxu1 %v4878_v43 }
 0x13f   : > { %4485 = vmatpush3.bf16.msra.mxu0 %v4855_v60  ;;  %4552 = vmatprep.subr.bf16.mxu1 %v4945_v1 }
 0x140   : > { %4486 = vmatprep.subr.bf16.mxu0 %v4945_v1 }
 0x142   : > { %4553 = vmatpush3.bf16.msra.mxu1 %v4880_v32 }
 0x143   : > { %4487 = vmatpush3.bf16.msra.mxu0 %v4857_v36 }
 0x144   : > { %4488 = vmatprep.subr.bf16.mxu0 %v4945_v1 }
 0x145   : > { %4555 = vmatmul.mubr.bf16.vlgmr.msra.gmra.mrb[12].mxu1 %v3712_v62 }
 0x147   : > { %4489 = vmatpush3.bf16.msra.mxu0 %v4859_v14 }
 0x148   : > { %4490 = vmatprep.subr.bf16.mxu0 %v4945_v1 }
 0x14b   : > { %4491 = vmatpush3.bf16.msra.mxu0 %v4861_v11 }
 0x14c   : > { %4492 = vmatprep.subr.bf16.mxu0 %v4945_v1 }
 0x14f   : > { %4493 = vmatpush3.bf16.msra.mxu0 %v4863_v3 }
 0x150   : > { %4518 = vmatprep.subr.bf16.mxu0 %v4945_v1 }
 0x152   : > { %4495 = vmatmul.mubr.bf16.vlgmr.msra.gmra.mrb[8].mxu0 %v3292_v15 }
 0x153   : > { %4519 = vmatpush3.bf16.msra.mxu0 %v4865_v24  ;;  %4534 = vmatprep.mubr.msk.bf16.mxu0 %vm4946_vm0, %v4945_v1 }
 0x154   : > { %4520 = vmatprep.subr.bf16.mxu0 %v4945_v1 }
 0x157   : > { %4521 = vmatpush3.bf16.msra.mxu0 %v4867_v31 }
 0x158   : > { %4522 = vmatprep.subr.bf16.mxu0 %v4945_v1 }
 0x15a   : > { %v2956_v21 = vpop.f32.mrb[0].mxu1 }
 0x15b   : > { %4523 = vmatpush3.bf16.msra.mxu0 %v4869_v42  ;;  %v2957_v54 = vadd.f32 %v4155_v56, %v2956_v21  ;;  %v4436_v44 = vpop.f32.mrb[1].mxu1 }
 0x15c   : > { %4524 = vmatprep.subr.bf16.mxu0 %v4945_v1  ;;  %v2959_v48 = vpop.f32.mrb[2].mxu1 }
 0x15d   : > { %v2962_v46 = vmax.f32 %v2957_v54, 0.0  ;;  %v4437_v49 = vpop.f32.mrb[3].mxu1 }
 0x15f   : > { %4525 = vmatpush3.bf16.msra.mxu0 %v4871_v37  ;;  %2963 = vst [vmem:[%s5694_s12 + $0x8] sm:$0xff] %v2962_v46 }
 0x160   : > { %4526 = vmatprep.subr.bf16.mxu0 %v4945_v1 }
 0x163   : > { %4527 = vmatpush3.bf16.msra.mxu0 %v4873_v38 }
 0x164   : > { %4528 = vmatprep.subr.bf16.mxu0 %v4945_v1 }
 0x167   : > { %4529 = vmatpush3.bf16.msra.mxu0 %v4875_v40 }
 0x168   : > { %4530 = vmatprep.subr.bf16.mxu0 %v4945_v1 }
 0x16b   : > { %4531 = vmatpush3.bf16.msra.mxu0 %v4877_v41 }
 0x16c   : > { %4532 = vmatprep.subr.bf16.mxu0 %v4945_v1  ;;  %v4207_v1 = vld [vmem:[%s5883_s4 + $0x3] ss:$0 sm:$0xff] }
 0x16f   : > { %4533 = vmatpush3.bf16.msra.mxu0 %v4879_v47 }
 0x172   : > { %4535 = vmatmul.mubr.bf16.vlgmr.msra.gmra.mrb[12].mxu0 %v3572_v34 }
 0x17a   : > { %v3236_v52 = vpop.f32.mrb[4].mxu1 }
 0x17b   : > { %v3237_v53 = vadd.f32 %v4207_v1, %v3236_v52  ;;  %v4476_v6 = vpop.f32.mrb[5].mxu1 }
 0x17c   : > { %v3239_v22 = vpop.f32.mrb[6].mxu1 }
 0x17d   : > { %v3242_v33 = vmax.f32 %v3237_v53, 0.0  ;;  %v4477_v57 = vpop.f32.mrb[7].mxu1 }
 0x17f   : > { %3243 = vst [vmem:[%s5694_s12 + $0x18] sm:$0xff] %v3242_v33 }
 0x1f8   : > { %v3516_v59 = vpop.f32.mrb[8].mxu1 }
 0x1f9   : > { %v3517_v10 = vadd.f32 %v4259_v58, %v3516_v59  ;;  %v4516_v35 = vpop.f32.mrb[9].mxu1 }
 0x1fa   : > { %v3519_v2 = vpop.f32.mrb[10].mxu1 }
 0x1fb   : > { %v3522_v23 = vmax.f32 %v3517_v10, 0.0  ;;  %v4517_v50 = vpop.f32.mrb[11].mxu1 }
 0x1fd   : > { %3523 = vst [vmem:[%s5694_s12 + $0x28] sm:$0xff] %v3522_v23 }
 0x205   : > { %v3096_v7 = vpop.f32.mrb[4].mxu0 }
 0x206   : > { %v3097_v27 = vadd.f32 %v4181_v0, %v3096_v7  ;;  %v4456_v8 = vpop.f32.mrb[5].mxu0 }
 0x207   : > { %v3099_v9 = vpop.f32.mrb[6].mxu0 }
 0x208   : > { %v3102_v4 = vmax.f32 %v3097_v27, 0.0  ;;  %v4457_v16 = vpop.f32.mrb[7].mxu0 }
 0x20a   : > { %3103 = vst [vmem:[%s5694_s12 + $0x10] sm:$0xff] %v3102_v4 }
 0x218   : > { %v3796_v61 = vpop.f32.mrb[12].mxu1 }
 0x219   : > { %v3797_v18 = vadd.f32 %v4311_v5, %v3796_v61  ;;  %v4556_v19 = vpop.f32.mrb[13].mxu1 }
 0x21a   : > { %v3799_v13 = vpop.f32.mrb[14].mxu1 }
 0x21b   : > { %v3802_v60 = vmax.f32 %v3797_v18, 0.0  ;;  %v4557_v63 = vpop.f32.mrb[15].mxu1 }
 0x21d   : > { %3803 = vst [vmem:[%s5694_s12 + $0x38] sm:$0xff] %v3802_v60 }
 0x225   : > { %v3376_v12 = vpop.f32.mrb[8].mxu0 }
 0x226   : > { %v3377_v39 = vadd.f32 %v4233_v17, %v3376_v12  ;;  %v4496_v28 = vpop.f32.mrb[9].mxu0 }
 0x227   : > { %v3379_v25 = vpop.f32.mrb[10].mxu0 }
 0x228   : > { %v3382_v36 = vmax.f32 %v3377_v39, 0.0  ;;  %v4497_v51 = vpop.f32.mrb[11].mxu0 }
 0x22a   : > { %3383 = vst [vmem:[%s5694_s12 + $0x20] sm:$0xff] %v3382_v36 }
 0x245   : > { %v3656_v29 = vpop.f32.mrb[12].mxu0 }
 0x246   : > { %v3657_v45 = vadd.f32 %v4285_v26, %v3656_v29  ;;  %v4536_v14 = vpop.f32.mrb[13].mxu0 }
 0x247   : > { %v3659_v43 = vpop.f32.mrb[14].mxu0 }
 0x248   : > { %v3662_v30 = vmax.f32 %v3657_v45, 0.0  ;;  %v4537_v20 = vpop.f32.mrb[15].mxu0 }
 0x24a   : > { %3663 = vst [vmem:[%s5694_s12 + $0x30] sm:$0xff] %v3662_v30 }
 0x24b   : > { %4894 = shalt.err (!%p4891_p3)
}
 0x24c   : > { %s4895_s15 = scalar_lea.hbm %s5834_s26, 1024  ;;  %s4899_s10 = scalar_lea.hbm %s5884_s5, 2048 }
 0x24d   : > { %p4896_p4 = scmp.ne.s32.totalorder %s5834_s26, %s4895_s15  ;;  %p4900_p9 = scmp.lt.u32.totalorder %s5834_s26, %s5884_s5 }
 0x24e   : > { %p4901_p10 = scmp.lt.u32.totalorder %s4899_s10, %s4895_s15  ;;  %p4903_p12 = scmp.lt.u32.totalorder %s4895_s15, %s5834_s26 }
 0x24f   : > { %p4897_p7 = pnand %p4896_p4, %p5016_p5 }
 0x250   : > { %p4902_p11 = por %p4901_p10, %p4900_p9 }
 0x251   : > { %p4898_p8 = pneg %p4897_p7 }
 0x252   : > { %p4904_p13 = por %p4903_p12, %p4902_p11 }
 0x254   : > { %p4905_p0 = pnand %p4904_p13, %p4898_p8 }
 0x256   : > { %4908 = shalt.err (!%p4905_p0)
}
 0x257   : > { %4560 = dma.vmem_to_hbm [thread:$0]  (%p5016_p5), %s5836_s16, 1024, %s5834_s26, %s3805_s30  }
 0x258 PF: > { %p4566_p1 = scmp.ge.s32.totalorder %s4943_s21, 2  ;;  %s3831_s14 = sand.u32 1, %s4931_s18  }
 0x259   : > { %s3832_s17 = scalar_lea.sflag [#allocation3], %s3831_s14 }
 0x25a   : > { %p4563_p2 = pnand %p4566_p1, %p5020_p6 }
 0x25c   : > { %4926 = dma.done.wait (!%p4563_p2), %s3832_s17, 1024  }
 0x25d   : > { %4928 = vsyncadd (!%p4563_p2), %s3832_s17, 4294966272  ;;  %p15_p3 = scmp.ge.s32.totalorder %s5003_s24, 4   ;;  %s5887_s18 = smov %s4935_s19 }
 0x25e   : > { %s5888_s19 = smov %s4939_s20  ;;  %s5889_s20 = smov %s5014_s27 }
 0x25f   : > { %s5890_s21 = smov %s5003_s24  ;;  %17 = sbr.rel (!%p15_p3) target bundleno = 3 (0x3), region = 95 }
 0x266   :  { %3837 = vsyncpa [#allocation3], 1 }
 0x267   :  { %3839 = vsyncpa [#allocation3 + $0x1], 1 }

</bundles_post_ra>
